<compile_context>
chip_gen: v7x
topology: tpu7x:2x2x1
jax: 0.10.0
libtpu: 0.0.40
codegen_flags: <defaults>
</compile_context>

<pallas_src>
import jax
import jax.numpy as jnp
from jax.experimental import pallas as pl
from jax.experimental.pallas import tpu as pltpu


def _round_up(x, m):
    return ((x + m - 1) // m) * m


# ----------------------------------------------------------------------------
# Fused multi-stage kernel (runs once per batch element / grid step).
# ----------------------------------------------------------------------------
def _make_fused_kernel(num_stages, num_layers, seq_len, num_classes, ncls_pad):
    dilations = tuple(2 ** i for i in range(num_layers))
    num_later = num_stages - 1
    T = seq_len

    def kernel(x_ref, m_ref, *rest):
        o_ref = rest[-1]
        (in_w1, in_b1, wd1, bd1, w11, b11, out_w1, out_b1) = rest[:8]
        if num_later:
            (in_ws, in_bs, wds, bds, w1s, b1s, out_ws, out_bs) = rest[8:16]

        m = m_ref[0]                                        # (T, 1)
        x = x_ref[0]                                        # (T, Cin)
        t_idx = jax.lax.broadcasted_iota(jnp.int32, (T, 1), 0)

        def run_stage(inp, in_w, in_b, wd_tap, bd, w1, b1, out_w, out_b):
            # Input 1x1 conv (unmasked, matching PyTorch SingleStageModel).
            out = jnp.dot(inp, in_w, preferred_element_type=jnp.float32) + in_b
            # Dilated residual layers; L is small and shifts are static, so
            # the loop is unrolled.
            # TODO(synk): for large L / long T, keep `out` in a VMEM scratch
            #   and use lax.fori_loop with dynamic tap indexing to bound live
            #   ranges (review item); unnecessary at L=3, T=16.
            for i in range(num_layers):
                d = dilations[i]
                # x[t-d] / x[t+d] via XLU roll + iota mask (no concat copies).
                x_prev = jnp.where(t_idx >= d,
                                   pltpu.roll(out, d, axis=0), 0.0)
                x_next = jnp.where(t_idx < T - d,
                                   pltpu.roll(out, T - d, axis=0), 0.0)
                h = (jnp.dot(x_prev, wd_tap(i, 0), preferred_element_type=jnp.float32)
                     + jnp.dot(out, wd_tap(i, 1), preferred_element_type=jnp.float32)
                     + jnp.dot(x_next, wd_tap(i, 2), preferred_element_type=jnp.float32)
                     + bd(i))
                h = jnp.maximum(h, 0.0)                     # ReLU
                y = jnp.dot(h, w1(i), preferred_element_type=jnp.float32) + b1(i)
                # TODO(synk): nn.Dropout() treated as identity (eval semantics).
                out = (out + y) * m                         # residual * mask
            logits = jnp.dot(out, out_w, preferred_element_type=jnp.float32) + out_b
            return logits * m                               # (T, ncls_pad)

        # ---- stage 1 ----
        logits = run_stage(
            x, in_w1[...], in_b1[...],
            lambda i, k: wd1[3 * i + k], lambda i: bd1[i],
            lambda i: w11[i], lambda i: b11[i],
            out_w1[...], out_b1[...])
        o_ref[0, 0] = logits

        # ---- stages 2..S: softmax over the real classes * mask, all in VMEM ----
        lane = jax.lax.broadcasted_iota(jnp.int32, (T, ncls_pad), 1)
        class_valid = lane < num_classes
        for s in range(num_later):
            z = jnp.where(class_valid, logits, -jnp.inf)
            z_max = jnp.max(z, axis=-1, keepdims=True)
            e = jnp.where(class_valid, jnp.exp(z - z_max), 0.0)
            denom = jnp.sum(e, axis=-1, keepdims=True)
            # approx=False keeps exact parity with the PyTorch softmax
            # (review correctness note); flip to approx=True for EUP speed.
            soft = e * pl.reciprocal(denom, approx=False) * m
            logits = run_stage(
                soft, in_ws[s], in_bs[s],
                lambda i, k, s=s: wds[s, 3 * i + k],
                lambda i, s=s: bds[s, i],
                lambda i, s=s: w1s[s, i],
                lambda i, s=s: b1s[s, i],
                out_ws[s], out_bs[s])
            o_ref[0, 1 + s] = logits

    return kernel


def _const_spec(arr):
    """Whole-array block, loaded once (constant block index across the grid)."""
    nd = arr.ndim

    def index_map(n):
        return (0,) * nd

    return pl.BlockSpec(arr.shape, index_map)


# ----------------------------------------------------------------------------
# Wrapper: one pallas_call for the whole MultiStageModel.
# ----------------------------------------------------------------------------
def multi_stage_forward(params, x_nct, mask_n1t):
    """x_nct: (N, dim, T), mask_n1t: (N, 1, T) -> (num_stages, N, num_classes, T)."""
    stage1 = params["stage1"]
    later = params["stages"]
    num_stages = 1 + len(later)
    N, dim, T = x_nct.shape
    L = stage1["w1"].shape[0]
    Ncls = stage1["out_w"].shape[1]
    NclsP = _round_up(max(Ncls, 128), 128)          # lane-dense class dimension
    assert T % 8 == 0 and 2 ** (L - 1) < T, "toy kernel assumes 8 | T and max dilation < T"

    # Kernel layout: (N, T, C) — time on sublanes, channels/classes on lanes.
    x = jnp.transpose(x_nct, (0, 2, 1))
    mask = jnp.transpose(mask_n1t, (0, 2, 1))       # (N, T, 1)

    cls_pad = NclsP - Ncls
    out_w1 = jnp.pad(stage1["out_w"], ((0, 0), (0, cls_pad)))
    out_b1 = jnp.pad(stage1["out_b"], ((0, 0), (0, cls_pad)))
    stage1_args = [stage1["in_w"], stage1["in_b"], stage1["wd"], stage1["bd"],
                   stage1["w1"], stage1["b1"], out_w1, out_b1]

    later_args = []
    if later:
        stk = lambda name: jnp.stack([p[name] for p in later], axis=0)
        later_args = [
            jnp.pad(stk("in_w"), ((0, 0), (0, cls_pad), (0, 0))),   # (S-1, NclsP, Cf)
            stk("in_b"), stk("wd"), stk("bd"), stk("w1"), stk("b1"),
            jnp.pad(stk("out_w"), ((0, 0), (0, 0), (0, cls_pad))),  # (S-1, Cf, NclsP)
            jnp.pad(stk("out_b"), ((0, 0), (0, 0), (0, cls_pad))),  # (S-1, 1, NclsP)
        ]
    weight_args = stage1_args + later_args

    in_specs = [pl.BlockSpec((1, T, dim), lambda n: (n, 0, 0)),
                pl.BlockSpec((1, T, 1), lambda n: (n, 0, 0))]
    in_specs += [_const_spec(w) for w in weight_args]

    kernel = _make_fused_kernel(num_stages, L, T, Ncls, NclsP)

    out_pad = pl.pallas_call(
        kernel,
        out_shape=jax.ShapeDtypeStruct((N, num_stages, T, NclsP), jnp.float32),
        grid=(N,),
        in_specs=in_specs,
        out_specs=pl.BlockSpec((1, num_stages, T, NclsP), lambda n: (n, 0, 0, 0)),
        compiler_params=pltpu.CompilerParams(
            dimension_semantics=("parallel",)),     # batch axis -> both TCs on v7x
    )(x, mask, *weight_args)

    out = out_pad[..., :Ncls]                       # drop lane padding
    return jnp.transpose(out, (1, 0, 3, 2))         # PyTorch layout (S, N, C, T)


# ----------------------------------------------------------------------------
# Parameters (synthetic, deterministic).  1x1 convs are stored as (Cin, Cout);
# dilated k=3 conv taps are stacked as (3*L, Cf, Cf) with tap 3i+{0,1,2}
# matching x[t-d] / x[t] / x[t+d] (transposed vs. PyTorch Conv1d (Cout,Cin,K)).
# ----------------------------------------------------------------------------
def init_single_stage(key, num_layers, num_f_maps, dim, num_classes):
    ks = jax.random.split(key, 8)
    s = 0.1
    return {
        "in_w": s * jax.random.normal(ks[0], (dim, num_f_maps), jnp.float32),
        "in_b": s * jax.random.normal(ks[1], (1, num_f_maps), jnp.float32),
        "wd":   s * jax.random.normal(ks[2], (3 * num_layers, num_f_maps, num_f_maps), jnp.float32),
        "bd":   s * jax.random.normal(ks[3], (num_layers, 1, num_f_maps), jnp.float32),
        "w1":   s * jax.random.normal(ks[4], (num_layers, num_f_maps, num_f_maps), jnp.float32),
        "b1":   s * jax.random.normal(ks[5], (num_layers, 1, num_f_maps), jnp.float32),
        "out_w": s * jax.random.normal(ks[6], (num_f_maps, num_classes), jnp.float32),
        "out_b": s * jax.random.normal(ks[7], (1, num_classes), jnp.float32),
    }


def init_multi_stage(key, num_stages, num_layers, num_f_maps, dim, num_classes):
    keys = jax.random.split(key, num_stages)
    stage1 = init_single_stage(keys[0], num_layers, num_f_maps, dim, num_classes)
    stages = [init_single_stage(k, num_layers, num_f_maps, num_classes, num_classes)
              for k in keys[1:]]
    return {"stage1": stage1, "stages": stages}


# ----------------------------------------------------------------------------
# Pure-JAX reference (mirrors PyTorch MultiStageModel.forward, eval mode).
# ----------------------------------------------------------------------------
def multi_stage_reference(params, x_nct, mask_n1t):
    hp = jax.lax.Precision.HIGHEST
    x = jnp.transpose(x_nct, (0, 2, 1))
    m = jnp.transpose(mask_n1t, (0, 2, 1))

    def stage(p, inp):
        out = jnp.einsum("ntc,cd->ntd", inp, p["in_w"], precision=hp) + p["in_b"]
        T = out.shape[1]
        for i in range(p["w1"].shape[0]):
            d = 2 ** i
            x_prev = jnp.pad(out, ((0, 0), (d, 0), (0, 0)))[:, :T, :]
            x_next = jnp.pad(out, ((0, 0), (0, d), (0, 0)))[:, d:, :]
            h = (jnp.einsum("ntc,cd->ntd", x_prev, p["wd"][3 * i + 0], precision=hp)
                 + jnp.einsum("ntc,cd->ntd", out, p["wd"][3 * i + 1], precision=hp)
                 + jnp.einsum("ntc,cd->ntd", x_next, p["wd"][3 * i + 2], precision=hp)
                 + p["bd"][i])
            h = jnp.maximum(h, 0.0)
            y = jnp.einsum("ntc,cd->ntd", h, p["w1"][i], precision=hp) + p["b1"][i]
            out = (out + y) * m
        return (jnp.einsum("ntc,cd->ntd", out, p["out_w"], precision=hp) + p["out_b"]) * m

    out = stage(params["stage1"], x)
    outs = [out]
    for p in params["stages"]:
        out = stage(p, jax.nn.softmax(out, axis=-1) * m)
        outs.append(out)
    return jnp.transpose(jnp.stack(outs, axis=0), (0, 1, 3, 2))


# ----------------------------------------------------------------------------
# Main
# ----------------------------------------------------------------------------
if __name__ == "__main__":
    num_stages, num_layers, num_f_maps, dim, num_classes = 3, 3, 32, 8, 6
    N, T = 2, 16

    key = jax.random.PRNGKey(0)
    kp, kx = jax.random.split(key)
    params = init_multi_stage(kp, num_stages, num_layers, num_f_maps, dim, num_classes)

    # PyTorch-layout inputs: x (N, dim, T); mask channel-0 slice (N, 1, T).
    x = jax.random.normal(kx, (N, dim, T), jnp.float32)
    valid = jnp.array([T, 12], dtype=jnp.int32)
    mask = (jnp.arange(T)[None, None, :] < valid[:, None, None]).astype(jnp.float32)

    fwd = jax.jit(multi_stage_forward)
    out = jax.block_until_ready(fwd(params, x, mask))   # (S, N, num_classes, T)

    assert out.shape == (num_stages, N, num_classes, T)
    assert bool(jnp.all(jnp.isfinite(out)))

    # Tolerance-check against the pure-JAX reference (PyTorch eval semantics).
    ref = multi_stage_reference(params, x, mask)
    assert bool(jnp.allclose(out, ref, atol=2e-3, rtol=2e-3)), \
        float(jnp.max(jnp.abs(out - ref)))

    print("KERNEL_OK")
</pallas_src>

<mosaic_0001>
module attributes {stable_mosaic.version = 11 : i64} {
  func.func @kernel(%arg0: i32, %arg1: memref<1x16x8xf32, #tpu.memory_space<vmem>>, %arg2: memref<1x16x1xf32, #tpu.memory_space<vmem>>, %arg3: memref<8x32xf32, #tpu.memory_space<vmem>>, %arg4: memref<1x32xf32, #tpu.memory_space<vmem>>, %arg5: memref<9x32x32xf32, #tpu.memory_space<vmem>>, %arg6: memref<3x1x32xf32, #tpu.memory_space<vmem>>, %arg7: memref<3x32x32xf32, #tpu.memory_space<vmem>>, %arg8: memref<3x1x32xf32, #tpu.memory_space<vmem>>, %arg9: memref<32x128xf32, #tpu.memory_space<vmem>>, %arg10: memref<1x128xf32, #tpu.memory_space<vmem>>, %arg11: memref<2x128x32xf32, #tpu.memory_space<vmem>>, %arg12: memref<2x1x32xf32, #tpu.memory_space<vmem>>, %arg13: memref<2x9x32x32xf32, #tpu.memory_space<vmem>>, %arg14: memref<2x3x1x32xf32, #tpu.memory_space<vmem>>, %arg15: memref<2x3x32x32xf32, #tpu.memory_space<vmem>>, %arg16: memref<2x3x1x32xf32, #tpu.memory_space<vmem>>, %arg17: memref<2x32x128xf32, #tpu.memory_space<vmem>>, %arg18: memref<2x1x128xf32, #tpu.memory_space<vmem>>, %arg19: memref<1x3x16x128xf32, #tpu.memory_space<vmem>>) attributes {dimension_semantics = [#tpu.dimension_semantics<parallel>], iteration_bounds = array<i64: 2>, scalar_prefetch = 0 : i64, scratch_operands = 0 : i64, tpu.core_type = #tpu.core_type<tc>, window_params = [{transform_indices = @transform_0, window_bounds = array<i64: 1, 16, 8>}, {transform_indices = @transform_1, window_bounds = array<i64: 1, 16, 1>}, {pipeline_mode = #tpu.pipeline_mode<synchronous>, transform_indices = @transform_2, window_bounds = array<i64: 8, 32>}, {pipeline_mode = #tpu.pipeline_mode<synchronous>, transform_indices = @transform_3, window_bounds = array<i64: 1, 32>}, {pipeline_mode = #tpu.pipeline_mode<synchronous>, transform_indices = @transform_4, window_bounds = array<i64: 9, 32, 32>}, {pipeline_mode = #tpu.pipeline_mode<synchronous>, transform_indices = @transform_5, window_bounds = array<i64: 3, 1, 32>}, {pipeline_mode = #tpu.pipeline_mode<synchronous>, transform_indices = @transform_6, window_bounds = array<i64: 3, 32, 32>}, {pipeline_mode = #tpu.pipeline_mode<synchronous>, transform_indices = @transform_7, window_bounds = array<i64: 3, 1, 32>}, {pipeline_mode = #tpu.pipeline_mode<synchronous>, transform_indices = @transform_8, window_bounds = array<i64: 32, 128>}, {pipeline_mode = #tpu.pipeline_mode<synchronous>, transform_indices = @transform_9, window_bounds = array<i64: 1, 128>}, {pipeline_mode = #tpu.pipeline_mode<synchronous>, transform_indices = @transform_10, window_bounds = array<i64: 2, 128, 32>}, {pipeline_mode = #tpu.pipeline_mode<synchronous>, transform_indices = @transform_11, window_bounds = array<i64: 2, 1, 32>}, {pipeline_mode = #tpu.pipeline_mode<synchronous>, transform_indices = @transform_12, window_bounds = array<i64: 2, 9, 32, 32>}, {pipeline_mode = #tpu.pipeline_mode<synchronous>, transform_indices = @transform_13, window_bounds = array<i64: 2, 3, 1, 32>}, {pipeline_mode = #tpu.pipeline_mode<synchronous>, transform_indices = @transform_14, window_bounds = array<i64: 2, 3, 32, 32>}, {pipeline_mode = #tpu.pipeline_mode<synchronous>, transform_indices = @transform_15, window_bounds = array<i64: 2, 3, 1, 32>}, {pipeline_mode = #tpu.pipeline_mode<synchronous>, transform_indices = @transform_16, window_bounds = array<i64: 2, 32, 128>}, {pipeline_mode = #tpu.pipeline_mode<synchronous>, transform_indices = @transform_17, window_bounds = array<i64: 2, 1, 128>}, {transform_indices = @transform_18, window_bounds = array<i64: 1, 3, 16, 128>}]} {
    %c0 = arith.constant 0 : index
    %c0_0 = arith.constant 0 : index
    %c0_1 = arith.constant 0 : index
    %0 = vector.load %arg2[%c0, %c0_0, %c0_1] : memref<1x16x1xf32, #tpu.memory_space<vmem>>, vector<1x16x1xf32>
    %1 = vector.shape_cast %0 : vector<1x16x1xf32> to vector<16x1xf32>
    %c0_2 = arith.constant 0 : index
    %c0_3 = arith.constant 0 : index
    %c0_4 = arith.constant 0 : index
    %2 = vector.load %arg1[%c0_2, %c0_3, %c0_4] : memref<1x16x8xf32, #tpu.memory_space<vmem>>, vector<1x16x8xf32>
    %3 = vector.shape_cast %2 : vector<1x16x8xf32> to vector<16x8xf32>
    %4 = tpu.iota {dimensions = array<i32: 0>} : vector<16x1xi32>
    %c0_5 = arith.constant 0 : index
    %c0_6 = arith.constant 0 : index
    %5 = vector.load %arg3[%c0_5, %c0_6] : memref<8x32xf32, #tpu.memory_space<vmem>>, vector<8x32xf32>
    %c0_7 = arith.constant 0 : index
    %c0_8 = arith.constant 0 : index
    %6 = vector.load %arg4[%c0_7, %c0_8] : memref<1x32xf32, #tpu.memory_space<vmem>>, vector<1x32xf32>
    %c0_9 = arith.constant 0 : index
    %c0_10 = arith.constant 0 : index
    %7 = vector.load %arg9[%c0_9, %c0_10] : memref<32x128xf32, #tpu.memory_space<vmem>>, vector<32x128xf32>
    %c0_11 = arith.constant 0 : index
    %c0_12 = arith.constant 0 : index
    %8 = vector.load %arg10[%c0_11, %c0_12] : memref<1x128xf32, #tpu.memory_space<vmem>>, vector<1x128xf32>
    %cst = arith.constant dense<0.000000e+00> : vector<16x32xf32>
    %9 = tpu.matmul %3, %5, %cst {dimension_numbers = #tpu.dot_dimension_numbers<[1], [0], [0], [1], [0, 0, 1, 1], [], []>} : vector<16x8xf32>, vector<8x32xf32>, vector<16x32xf32> -> vector<16x32xf32>
    %10 = vector.broadcast %6 : vector<1x32xf32> to vector<16x32xf32>
    %11 = arith.addf %9, %10 : vector<16x32xf32>
    %c1_i32 = arith.constant 1 : i32
    %12 = vector.broadcast %c1_i32 : i32 to vector<16x1xi32>
    %13 = arith.cmpi sge, %4, %12 : vector<16x1xi32>
    %c1_i32_13 = arith.constant 1 : i32
    %14 = tpu.dynamic_rotate %11 by %c1_i32_13 dim 0 : vector<16x32xf32>, i32 -> vector<16x32xf32>
    %cst_14 = arith.constant 0.000000e+00 : f32
    %15 = vector.shape_cast %13 : vector<16x1xi1> to vector<16x1xi1>
    %16 = vector.broadcast %15 : vector<16x1xi1> to vector<16x32xi1>
    %17 = vector.broadcast %cst_14 : f32 to vector<16x32xf32>
    %18 = arith.select %16, %14, %17 : vector<16x32xi1>, vector<16x32xf32>
    %c15_i32 = arith.constant 15 : i32
    %19 = vector.broadcast %c15_i32 : i32 to vector<16x1xi32>
    %20 = arith.cmpi slt, %4, %19 : vector<16x1xi32>
    %c15_i32_15 = arith.constant 15 : i32
    %21 = tpu.dynamic_rotate %11 by %c15_i32_15 dim 0 : vector<16x32xf32>, i32 -> vector<16x32xf32>
    %cst_16 = arith.constant 0.000000e+00 : f32
    %22 = vector.shape_cast %20 : vector<16x1xi1> to vector<16x1xi1>
    %23 = vector.broadcast %22 : vector<16x1xi1> to vector<16x32xi1>
    %24 = vector.broadcast %cst_16 : f32 to vector<16x32xf32>
    %25 = arith.select %23, %21, %24 : vector<16x32xi1>, vector<16x32xf32>
    %c0_17 = arith.constant 0 : index
    %c0_18 = arith.constant 0 : index
    %c0_19 = arith.constant 0 : index
    %26 = vector.load %arg5[%c0_17, %c0_18, %c0_19] : memref<9x32x32xf32, #tpu.memory_space<vmem>>, vector<1x32x32xf32>
    %27 = vector.shape_cast %26 : vector<1x32x32xf32> to vector<32x32xf32>
    %cst_20 = arith.constant dense<0.000000e+00> : vector<16x32xf32>
    %28 = tpu.matmul %18, %27, %cst_20 {dimension_numbers = #tpu.dot_dimension_numbers<[1], [0], [0], [1], [0, 0, 1, 1], [], []>} : vector<16x32xf32>, vector<32x32xf32>, vector<16x32xf32> -> vector<16x32xf32>
    %c1 = arith.constant 1 : index
    %c0_21 = arith.constant 0 : index
    %c0_22 = arith.constant 0 : index
    %29 = vector.load %arg5[%c1, %c0_21, %c0_22] : memref<9x32x32xf32, #tpu.memory_space<vmem>>, vector<1x32x32xf32>
    %30 = vector.shape_cast %29 : vector<1x32x32xf32> to vector<32x32xf32>
    %cst_23 = arith.constant dense<0.000000e+00> : vector<16x32xf32>
    %31 = tpu.matmul %11, %30, %cst_23 {dimension_numbers = #tpu.dot_dimension_numbers<[1], [0], [0], [1], [0, 0, 1, 1], [], []>} : vector<16x32xf32>, vector<32x32xf32>, vector<16x32xf32> -> vector<16x32xf32>
    %32 = arith.addf %28, %31 : vector<16x32xf32>
    %c2 = arith.constant 2 : index
    %c0_24 = arith.constant 0 : index
    %c0_25 = arith.constant 0 : index
    %33 = vector.load %arg5[%c2, %c0_24, %c0_25] : memref<9x32x32xf32, #tpu.memory_space<vmem>>, vector<1x32x32xf32>
    %34 = vector.shape_cast %33 : vector<1x32x32xf32> to vector<32x32xf32>
    %cst_26 = arith.constant dense<0.000000e+00> : vector<16x32xf32>
    %35 = tpu.matmul %25, %34, %cst_26 {dimension_numbers = #tpu.dot_dimension_numbers<[1], [0], [0], [1], [0, 0, 1, 1], [], []>} : vector<16x32xf32>, vector<32x32xf32>, vector<16x32xf32> -> vector<16x32xf32>
    %36 = arith.addf %32, %35 : vector<16x32xf32>
    %c0_27 = arith.constant 0 : index
    %c0_28 = arith.constant 0 : index
    %c0_29 = arith.constant 0 : index
    %37 = vector.load %arg6[%c0_27, %c0_28, %c0_29] : memref<3x1x32xf32, #tpu.memory_space<vmem>>, vector<1x1x32xf32>
    %38 = vector.shape_cast %37 : vector<1x1x32xf32> to vector<1x32xf32>
    %39 = vector.broadcast %38 : vector<1x32xf32> to vector<16x32xf32>
    %40 = arith.addf %36, %39 : vector<16x32xf32>
    %cst_30 = arith.constant 0.000000e+00 : f32
    %41 = vector.broadcast %cst_30 : f32 to vector<16x32xf32>
    %42 = arith.maximumf %40, %41 : vector<16x32xf32>
    %c0_31 = arith.constant 0 : index
    %c0_32 = arith.constant 0 : index
    %c0_33 = arith.constant 0 : index
    %43 = vector.load %arg7[%c0_31, %c0_32, %c0_33] : memref<3x32x32xf32, #tpu.memory_space<vmem>>, vector<1x32x32xf32>
    %44 = vector.shape_cast %43 : vector<1x32x32xf32> to vector<32x32xf32>
    %cst_34 = arith.constant dense<0.000000e+00> : vector<16x32xf32>
    %45 = tpu.matmul %42, %44, %cst_34 {dimension_numbers = #tpu.dot_dimension_numbers<[1], [0], [0], [1], [0, 0, 1, 1], [], []>} : vector<16x32xf32>, vector<32x32xf32>, vector<16x32xf32> -> vector<16x32xf32>
    %c0_35 = arith.constant 0 : index
    %c0_36 = arith.constant 0 : index
    %c0_37 = arith.constant 0 : index
    %46 = vector.load %arg8[%c0_35, %c0_36, %c0_37] : memref<3x1x32xf32, #tpu.memory_space<vmem>>, vector<1x1x32xf32>
    %47 = vector.shape_cast %46 : vector<1x1x32xf32> to vector<1x32xf32>
    %48 = vector.broadcast %47 : vector<1x32xf32> to vector<16x32xf32>
    %49 = arith.addf %45, %48 : vector<16x32xf32>
    %50 = arith.addf %11, %49 : vector<16x32xf32>
    %51 = vector.broadcast %1 : vector<16x1xf32> to vector<16x32xf32>
    %52 = arith.mulf %50, %51 : vector<16x32xf32>
    %c2_i32 = arith.constant 2 : i32
    %53 = vector.broadcast %c2_i32 : i32 to vector<16x1xi32>
    %54 = arith.cmpi sge, %4, %53 : vector<16x1xi32>
    %c2_i32_38 = arith.constant 2 : i32
    %55 = tpu.dynamic_rotate %52 by %c2_i32_38 dim 0 : vector<16x32xf32>, i32 -> vector<16x32xf32>
    %cst_39 = arith.constant 0.000000e+00 : f32
    %56 = vector.shape_cast %54 : vector<16x1xi1> to vector<16x1xi1>
    %57 = vector.broadcast %56 : vector<16x1xi1> to vector<16x32xi1>
    %58 = vector.broadcast %cst_39 : f32 to vector<16x32xf32>
    %59 = arith.select %57, %55, %58 : vector<16x32xi1>, vector<16x32xf32>
    %c14_i32 = arith.constant 14 : i32
    %60 = vector.broadcast %c14_i32 : i32 to vector<16x1xi32>
    %61 = arith.cmpi slt, %4, %60 : vector<16x1xi32>
    %c14_i32_40 = arith.constant 14 : i32
    %62 = tpu.dynamic_rotate %52 by %c14_i32_40 dim 0 : vector<16x32xf32>, i32 -> vector<16x32xf32>
    %cst_41 = arith.constant 0.000000e+00 : f32
    %63 = vector.shape_cast %61 : vector<16x1xi1> to vector<16x1xi1>
    %64 = vector.broadcast %63 : vector<16x1xi1> to vector<16x32xi1>
    %65 = vector.broadcast %cst_41 : f32 to vector<16x32xf32>
    %66 = arith.select %64, %62, %65 : vector<16x32xi1>, vector<16x32xf32>
    %c3 = arith.constant 3 : index
    %c0_42 = arith.constant 0 : index
    %c0_43 = arith.constant 0 : index
    %67 = vector.load %arg5[%c3, %c0_42, %c0_43] : memref<9x32x32xf32, #tpu.memory_space<vmem>>, vector<1x32x32xf32>
    %68 = vector.shape_cast %67 : vector<1x32x32xf32> to vector<32x32xf32>
    %cst_44 = arith.constant dense<0.000000e+00> : vector<16x32xf32>
    %69 = tpu.matmul %59, %68, %cst_44 {dimension_numbers = #tpu.dot_dimension_numbers<[1], [0], [0], [1], [0, 0, 1, 1], [], []>} : vector<16x32xf32>, vector<32x32xf32>, vector<16x32xf32> -> vector<16x32xf32>
    %c4 = arith.constant 4 : index
    %c0_45 = arith.constant 0 : index
    %c0_46 = arith.constant 0 : index
    %70 = vector.load %arg5[%c4, %c0_45, %c0_46] : memref<9x32x32xf32, #tpu.memory_space<vmem>>, vector<1x32x32xf32>
    %71 = vector.shape_cast %70 : vector<1x32x32xf32> to vector<32x32xf32>
    %cst_47 = arith.constant dense<0.000000e+00> : vector<16x32xf32>
    %72 = tpu.matmul %52, %71, %cst_47 {dimension_numbers = #tpu.dot_dimension_numbers<[1], [0], [0], [1], [0, 0, 1, 1], [], []>} : vector<16x32xf32>, vector<32x32xf32>, vector<16x32xf32> -> vector<16x32xf32>
    %73 = arith.addf %69, %72 : vector<16x32xf32>
    %c5 = arith.constant 5 : index
    %c0_48 = arith.constant 0 : index
    %c0_49 = arith.constant 0 : index
    %74 = vector.load %arg5[%c5, %c0_48, %c0_49] : memref<9x32x32xf32, #tpu.memory_space<vmem>>, vector<1x32x32xf32>
    %75 = vector.shape_cast %74 : vector<1x32x32xf32> to vector<32x32xf32>
    %cst_50 = arith.constant dense<0.000000e+00> : vector<16x32xf32>
    %76 = tpu.matmul %66, %75, %cst_50 {dimension_numbers = #tpu.dot_dimension_numbers<[1], [0], [0], [1], [0, 0, 1, 1], [], []>} : vector<16x32xf32>, vector<32x32xf32>, vector<16x32xf32> -> vector<16x32xf32>
    %77 = arith.addf %73, %76 : vector<16x32xf32>
    %c1_51 = arith.constant 1 : index
    %c0_52 = arith.constant 0 : index
    %c0_53 = arith.constant 0 : index
    %78 = vector.load %arg6[%c1_51, %c0_52, %c0_53] : memref<3x1x32xf32, #tpu.memory_space<vmem>>, vector<1x1x32xf32>
    %79 = vector.shape_cast %78 : vector<1x1x32xf32> to vector<1x32xf32>
    %80 = vector.broadcast %79 : vector<1x32xf32> to vector<16x32xf32>
    %81 = arith.addf %77, %80 : vector<16x32xf32>
    %cst_54 = arith.constant 0.000000e+00 : f32
    %82 = vector.broadcast %cst_54 : f32 to vector<16x32xf32>
    %83 = arith.maximumf %81, %82 : vector<16x32xf32>
    %c1_55 = arith.constant 1 : index
    %c0_56 = arith.constant 0 : index
    %c0_57 = arith.constant 0 : index
    %84 = vector.load %arg7[%c1_55, %c0_56, %c0_57] : memref<3x32x32xf32, #tpu.memory_space<vmem>>, vector<1x32x32xf32>
    %85 = vector.shape_cast %84 : vector<1x32x32xf32> to vector<32x32xf32>
    %cst_58 = arith.constant dense<0.000000e+00> : vector<16x32xf32>
    %86 = tpu.matmul %83, %85, %cst_58 {dimension_numbers = #tpu.dot_dimension_numbers<[1], [0], [0], [1], [0, 0, 1, 1], [], []>} : vector<16x32xf32>, vector<32x32xf32>, vector<16x32xf32> -> vector<16x32xf32>
    %c1_59 = arith.constant 1 : index
    %c0_60 = arith.constant 0 : index
    %c0_61 = arith.constant 0 : index
    %87 = vector.load %arg8[%c1_59, %c0_60, %c0_61] : memref<3x1x32xf32, #tpu.memory_space<vmem>>, vector<1x1x32xf32>
    %88 = vector.shape_cast %87 : vector<1x1x32xf32> to vector<1x32xf32>
    %89 = vector.broadcast %88 : vector<1x32xf32> to vector<16x32xf32>
    %90 = arith.addf %86, %89 : vector<16x32xf32>
    %91 = arith.addf %52, %90 : vector<16x32xf32>
    %92 = vector.broadcast %1 : vector<16x1xf32> to vector<16x32xf32>
    %93 = arith.mulf %91, %92 : vector<16x32xf32>
    %c4_i32 = arith.constant 4 : i32
    %94 = vector.broadcast %c4_i32 : i32 to vector<16x1xi32>
    %95 = arith.cmpi sge, %4, %94 : vector<16x1xi32>
    %c4_i32_62 = arith.constant 4 : i32
    %96 = tpu.dynamic_rotate %93 by %c4_i32_62 dim 0 : vector<16x32xf32>, i32 -> vector<16x32xf32>
    %cst_63 = arith.constant 0.000000e+00 : f32
    %97 = vector.shape_cast %95 : vector<16x1xi1> to vector<16x1xi1>
    %98 = vector.broadcast %97 : vector<16x1xi1> to vector<16x32xi1>
    %99 = vector.broadcast %cst_63 : f32 to vector<16x32xf32>
    %100 = arith.select %98, %96, %99 : vector<16x32xi1>, vector<16x32xf32>
    %c12_i32 = arith.constant 12 : i32
    %101 = vector.broadcast %c12_i32 : i32 to vector<16x1xi32>
    %102 = arith.cmpi slt, %4, %101 : vector<16x1xi32>
    %c12_i32_64 = arith.constant 12 : i32
    %103 = tpu.dynamic_rotate %93 by %c12_i32_64 dim 0 : vector<16x32xf32>, i32 -> vector<16x32xf32>
    %cst_65 = arith.constant 0.000000e+00 : f32
    %104 = vector.shape_cast %102 : vector<16x1xi1> to vector<16x1xi1>
    %105 = vector.broadcast %104 : vector<16x1xi1> to vector<16x32xi1>
    %106 = vector.broadcast %cst_65 : f32 to vector<16x32xf32>
    %107 = arith.select %105, %103, %106 : vector<16x32xi1>, vector<16x32xf32>
    %c6 = arith.constant 6 : index
    %c0_66 = arith.constant 0 : index
    %c0_67 = arith.constant 0 : index
    %108 = vector.load %arg5[%c6, %c0_66, %c0_67] : memref<9x32x32xf32, #tpu.memory_space<vmem>>, vector<1x32x32xf32>
    %109 = vector.shape_cast %108 : vector<1x32x32xf32> to vector<32x32xf32>
    %cst_68 = arith.constant dense<0.000000e+00> : vector<16x32xf32>
    %110 = tpu.matmul %100, %109, %cst_68 {dimension_numbers = #tpu.dot_dimension_numbers<[1], [0], [0], [1], [0, 0, 1, 1], [], []>} : vector<16x32xf32>, vector<32x32xf32>, vector<16x32xf32> -> vector<16x32xf32>
    %c7 = arith.constant 7 : index
    %c0_69 = arith.constant 0 : index
    %c0_70 = arith.constant 0 : index
    %111 = vector.load %arg5[%c7, %c0_69, %c0_70] : memref<9x32x32xf32, #tpu.memory_space<vmem>>, vector<1x32x32xf32>
    %112 = vector.shape_cast %111 : vector<1x32x32xf32> to vector<32x32xf32>
    %cst_71 = arith.constant dense<0.000000e+00> : vector<16x32xf32>
    %113 = tpu.matmul %93, %112, %cst_71 {dimension_numbers = #tpu.dot_dimension_numbers<[1], [0], [0], [1], [0, 0, 1, 1], [], []>} : vector<16x32xf32>, vector<32x32xf32>, vector<16x32xf32> -> vector<16x32xf32>
    %114 = arith.addf %110, %113 : vector<16x32xf32>
    %c8 = arith.constant 8 : index
    %c0_72 = arith.constant 0 : index
    %c0_73 = arith.constant 0 : index
    %115 = vector.load %arg5[%c8, %c0_72, %c0_73] : memref<9x32x32xf32, #tpu.memory_space<vmem>>, vector<1x32x32xf32>
    %116 = vector.shape_cast %115 : vector<1x32x32xf32> to vector<32x32xf32>
    %cst_74 = arith.constant dense<0.000000e+00> : vector<16x32xf32>
    %117 = tpu.matmul %107, %116, %cst_74 {dimension_numbers = #tpu.dot_dimension_numbers<[1], [0], [0], [1], [0, 0, 1, 1], [], []>} : vector<16x32xf32>, vector<32x32xf32>, vector<16x32xf32> -> vector<16x32xf32>
    %118 = arith.addf %114, %117 : vector<16x32xf32>
    %c2_75 = arith.constant 2 : index
    %c0_76 = arith.constant 0 : index
    %c0_77 = arith.constant 0 : index
    %119 = vector.load %arg6[%c2_75, %c0_76, %c0_77] : memref<3x1x32xf32, #tpu.memory_space<vmem>>, vector<1x1x32xf32>
    %120 = vector.shape_cast %119 : vector<1x1x32xf32> to vector<1x32xf32>
    %121 = vector.broadcast %120 : vector<1x32xf32> to vector<16x32xf32>
    %122 = arith.addf %118, %121 : vector<16x32xf32>
    %cst_78 = arith.constant 0.000000e+00 : f32
    %123 = vector.broadcast %cst_78 : f32 to vector<16x32xf32>
    %124 = arith.maximumf %122, %123 : vector<16x32xf32>
    %c2_79 = arith.constant 2 : index
    %c0_80 = arith.constant 0 : index
    %c0_81 = arith.constant 0 : index
    %125 = vector.load %arg7[%c2_79, %c0_80, %c0_81] : memref<3x32x32xf32, #tpu.memory_space<vmem>>, vector<1x32x32xf32>
    %126 = vector.shape_cast %125 : vector<1x32x32xf32> to vector<32x32xf32>
    %cst_82 = arith.constant dense<0.000000e+00> : vector<16x32xf32>
    %127 = tpu.matmul %124, %126, %cst_82 {dimension_numbers = #tpu.dot_dimension_numbers<[1], [0], [0], [1], [0, 0, 1, 1], [], []>} : vector<16x32xf32>, vector<32x32xf32>, vector<16x32xf32> -> vector<16x32xf32>
    %c2_83 = arith.constant 2 : index
    %c0_84 = arith.constant 0 : index
    %c0_85 = arith.constant 0 : index
    %128 = vector.load %arg8[%c2_83, %c0_84, %c0_85] : memref<3x1x32xf32, #tpu.memory_space<vmem>>, vector<1x1x32xf32>
    %129 = vector.shape_cast %128 : vector<1x1x32xf32> to vector<1x32xf32>
    %130 = vector.broadcast %129 : vector<1x32xf32> to vector<16x32xf32>
    %131 = arith.addf %127, %130 : vector<16x32xf32>
    %132 = arith.addf %93, %131 : vector<16x32xf32>
    %133 = vector.broadcast %1 : vector<16x1xf32> to vector<16x32xf32>
    %134 = arith.mulf %132, %133 : vector<16x32xf32>
    %cst_86 = arith.constant dense<0.000000e+00> : vector<16x128xf32>
    %135 = tpu.matmul %134, %7, %cst_86 {dimension_numbers = #tpu.dot_dimension_numbers<[1], [0], [0], [1], [0, 0, 1, 1], [], []>} : vector<16x32xf32>, vector<32x128xf32>, vector<16x128xf32> -> vector<16x128xf32>
    %136 = vector.broadcast %8 : vector<1x128xf32> to vector<16x128xf32>
    %137 = arith.addf %135, %136 : vector<16x128xf32>
    %138 = vector.broadcast %1 : vector<16x1xf32> to vector<16x128xf32>
    %139 = arith.mulf %137, %138 : vector<16x128xf32>
    %c0_87 = arith.constant 0 : index
    %c0_88 = arith.constant 0 : index
    %c0_89 = arith.constant 0 : index
    %c0_90 = arith.constant 0 : index
    %140 = vector.load %arg19[%c0_87, %c0_88, %c0_89, %c0_90] : memref<1x3x16x128xf32, #tpu.memory_space<vmem>>, vector<1x1x16x128xf32>
    %141 = vector.shape_cast %140 : vector<1x1x16x128xf32> to vector<16x128xf32>
    %142 = vector.shape_cast %139 : vector<16x128xf32> to vector<1x1x16x128xf32>
    tpu.vector_store %arg19[%c0_87, %c0_88, %c0_89, %c0_90], %142 {strides = array<i32>} : memref<1x3x16x128xf32, #tpu.memory_space<vmem>>, vector<1x1x16x128xf32>,
    %143 = tpu.iota {dimensions = array<i32: 1>} : vector<16x128xi32>
    %c6_i32 = arith.constant 6 : i32
    %144 = vector.broadcast %c6_i32 : i32 to vector<16x128xi32>
    %145 = arith.cmpi slt, %143, %144 : vector<16x128xi32>
    %cst_91 = arith.constant 0xFF800000 : f32
    %146 = vector.broadcast %cst_91 : f32 to vector<16x128xf32>
    %147 = arith.select %145, %139, %146 : vector<16x128xi1>, vector<16x128xf32>
    %cst_92 = arith.constant dense<0xFF800000> : vector<16xf32>
    %148 = vector.multi_reduction <maximumf>, %147, %cst_92 [1] : vector<16x128xf32> to vector<16xf32>
    %149 = vector.shape_cast %148 : vector<16xf32> to vector<16x1xf32>
    %150 = vector.broadcast %149 : vector<16x1xf32> to vector<16x128xf32>
    %151 = arith.subf %147, %150 : vector<16x128xf32>
    %152 = math.exp %151 : vector<16x128xf32>
    %cst_93 = arith.constant 0.000000e+00 : f32
    %153 = vector.broadcast %cst_93 : f32 to vector<16x128xf32>
    %154 = arith.select %145, %152, %153 : vector<16x128xi1>, vector<16x128xf32>
    %cst_94 = arith.constant dense<0.000000e+00> : vector<16xf32>
    %155 = vector.multi_reduction <add>, %154, %cst_94 [1] : vector<16x128xf32> to vector<16xf32>
    %156 = vector.shape_cast %155 : vector<16xf32> to vector<16x1xf32>
    %157 = tpu.reciprocal %156 : vector<16x1xf32> -> vector<16x1xf32>
    %158 = vector.broadcast %157 : vector<16x1xf32> to vector<16x128xf32>
    %159 = arith.mulf %154, %158 : vector<16x128xf32>
    %160 = vector.broadcast %1 : vector<16x1xf32> to vector<16x128xf32>
    %161 = arith.mulf %159, %160 : vector<16x128xf32>
    %c0_95 = arith.constant 0 : index
    %c0_96 = arith.constant 0 : index
    %c0_97 = arith.constant 0 : index
    %162 = vector.load %arg11[%c0_95, %c0_96, %c0_97] : memref<2x128x32xf32, #tpu.memory_space<vmem>>, vector<1x128x32xf32>
    %163 = vector.shape_cast %162 : vector<1x128x32xf32> to vector<128x32xf32>
    %c0_98 = arith.constant 0 : index
    %c0_99 = arith.constant 0 : index
    %c0_100 = arith.constant 0 : index
    %164 = vector.load %arg12[%c0_98, %c0_99, %c0_100] : memref<2x1x32xf32, #tpu.memory_space<vmem>>, vector<1x1x32xf32>
    %165 = vector.shape_cast %164 : vector<1x1x32xf32> to vector<1x32xf32>
    %c0_101 = arith.constant 0 : index
    %c0_102 = arith.constant 0 : index
    %c0_103 = arith.constant 0 : index
    %166 = vector.load %arg17[%c0_101, %c0_102, %c0_103] : memref<2x32x128xf32, #tpu.memory_space<vmem>>, vector<1x32x128xf32>
    %167 = vector.shape_cast %166 : vector<1x32x128xf32> to vector<32x128xf32>
    %c0_104 = arith.constant 0 : index
    %c0_105 = arith.constant 0 : index
    %c0_106 = arith.constant 0 : index
    %168 = vector.load %arg18[%c0_104, %c0_105, %c0_106] : memref<2x1x128xf32, #tpu.memory_space<vmem>>, vector<1x1x128xf32>
    %169 = vector.shape_cast %168 : vector<1x1x128xf32> to vector<1x128xf32>
    %cst_107 = arith.constant dense<0.000000e+00> : vector<16x32xf32>
    %170 = tpu.matmul %161, %163, %cst_107 {dimension_numbers = #tpu.dot_dimension_numbers<[1], [0], [0], [1], [0, 0, 1, 1], [], []>} : vector<16x128xf32>, vector<128x32xf32>, vector<16x32xf32> -> vector<16x32xf32>
    %171 = vector.broadcast %165 : vector<1x32xf32> to vector<16x32xf32>
    %172 = arith.addf %170, %171 : vector<16x32xf32>
    %c1_i32_108 = arith.constant 1 : i32
    %173 = vector.broadcast %c1_i32_108 : i32 to vector<16x1xi32>
    %174 = arith.cmpi sge, %4, %173 : vector<16x1xi32>
    %c1_i32_109 = arith.constant 1 : i32
    %175 = tpu.dynamic_rotate %172 by %c1_i32_109 dim 0 : vector<16x32xf32>, i32 -> vector<16x32xf32>
    %cst_110 = arith.constant 0.000000e+00 : f32
    %176 = vector.shape_cast %174 : vector<16x1xi1> to vector<16x1xi1>
    %177 = vector.broadcast %176 : vector<16x1xi1> to vector<16x32xi1>
    %178 = vector.broadcast %cst_110 : f32 to vector<16x32xf32>
    %179 = arith.select %177, %175, %178 : vector<16x32xi1>, vector<16x32xf32>
    %c15_i32_111 = arith.constant 15 : i32
    %180 = vector.broadcast %c15_i32_111 : i32 to vector<16x1xi32>
    %181 = arith.cmpi slt, %4, %180 : vector<16x1xi32>
    %c15_i32_112 = arith.constant 15 : i32
    %182 = tpu.dynamic_rotate %172 by %c15_i32_112 dim 0 : vector<16x32xf32>, i32 -> vector<16x32xf32>
    %cst_113 = arith.constant 0.000000e+00 : f32
    %183 = vector.shape_cast %181 : vector<16x1xi1> to vector<16x1xi1>
    %184 = vector.broadcast %183 : vector<16x1xi1> to vector<16x32xi1>
    %185 = vector.broadcast %cst_113 : f32 to vector<16x32xf32>
    %186 = arith.select %184, %182, %185 : vector<16x32xi1>, vector<16x32xf32>
    %c0_114 = arith.constant 0 : index
    %c0_115 = arith.constant 0 : index
    %c0_116 = arith.constant 0 : index
    %c0_117 = arith.constant 0 : index
    %187 = vector.load %arg13[%c0_114, %c0_115, %c0_116, %c0_117] : memref<2x9x32x32xf32, #tpu.memory_space<vmem>>, vector<1x1x32x32xf32>
    %188 = vector.shape_cast %187 : vector<1x1x32x32xf32> to vector<32x32xf32>
    %cst_118 = arith.constant dense<0.000000e+00> : vector<16x32xf32>
    %189 = tpu.matmul %179, %188, %cst_118 {dimension_numbers = #tpu.dot_dimension_numbers<[1], [0], [0], [1], [0, 0, 1, 1], [], []>} : vector<16x32xf32>, vector<32x32xf32>, vector<16x32xf32> -> vector<16x32xf32>
    %c0_119 = arith.constant 0 : index
    %c1_120 = arith.constant 1 : index
    %c0_121 = arith.constant 0 : index
    %c0_122 = arith.constant 0 : index
    %190 = vector.load %arg13[%c0_119, %c1_120, %c0_121, %c0_122] : memref<2x9x32x32xf32, #tpu.memory_space<vmem>>, vector<1x1x32x32xf32>
    %191 = vector.shape_cast %190 : vector<1x1x32x32xf32> to vector<32x32xf32>
    %cst_123 = arith.constant dense<0.000000e+00> : vector<16x32xf32>
    %192 = tpu.matmul %172, %191, %cst_123 {dimension_numbers = #tpu.dot_dimension_numbers<[1], [0], [0], [1], [0, 0, 1, 1], [], []>} : vector<16x32xf32>, vector<32x32xf32>, vector<16x32xf32> -> vector<16x32xf32>
    %193 = arith.addf %189, %192 : vector<16x32xf32>
    %c0_124 = arith.constant 0 : index
    %c2_125 = arith.constant 2 : index
    %c0_126 = arith.constant 0 : index
    %c0_127 = arith.constant 0 : index
    %194 = vector.load %arg13[%c0_124, %c2_125, %c0_126, %c0_127] : memref<2x9x32x32xf32, #tpu.memory_space<vmem>>, vector<1x1x32x32xf32>
    %195 = vector.shape_cast %194 : vector<1x1x32x32xf32> to vector<32x32xf32>
    %cst_128 = arith.constant dense<0.000000e+00> : vector<16x32xf32>
    %196 = tpu.matmul %186, %195, %cst_128 {dimension_numbers = #tpu.dot_dimension_numbers<[1], [0], [0], [1], [0, 0, 1, 1], [], []>} : vector<16x32xf32>, vector<32x32xf32>, vector<16x32xf32> -> vector<16x32xf32>
    %197 = arith.addf %193, %196 : vector<16x32xf32>
    %c0_129 = arith.constant 0 : index
    %c0_130 = arith.constant 0 : index
    %c0_131 = arith.constant 0 : index
    %c0_132 = arith.constant 0 : index
    %198 = vector.load %arg14[%c0_129, %c0_130, %c0_131, %c0_132] : memref<2x3x1x32xf32, #tpu.memory_space<vmem>>, vector<1x1x1x32xf32>
    %199 = vector.shape_cast %198 : vector<1x1x1x32xf32> to vector<1x32xf32>
    %200 = vector.broadcast %199 : vector<1x32xf32> to vector<16x32xf32>
    %201 = arith.addf %197, %200 : vector<16x32xf32>
    %cst_133 = arith.constant 0.000000e+00 : f32
    %202 = vector.broadcast %cst_133 : f32 to vector<16x32xf32>
    %203 = arith.maximumf %201, %202 : vector<16x32xf32>
    %c0_134 = arith.constant 0 : index
    %c0_135 = arith.constant 0 : index
    %c0_136 = arith.constant 0 : index
    %c0_137 = arith.constant 0 : index
    %204 = vector.load %arg15[%c0_134, %c0_135, %c0_136, %c0_137] : memref<2x3x32x32xf32, #tpu.memory_space<vmem>>, vector<1x1x32x32xf32>
    %205 = vector.shape_cast %204 : vector<1x1x32x32xf32> to vector<32x32xf32>
    %cst_138 = arith.constant dense<0.000000e+00> : vector<16x32xf32>
    %206 = tpu.matmul %203, %205, %cst_138 {dimension_numbers = #tpu.dot_dimension_numbers<[1], [0], [0], [1], [0, 0, 1, 1], [], []>} : vector<16x32xf32>, vector<32x32xf32>, vector<16x32xf32> -> vector<16x32xf32>
    %c0_139 = arith.constant 0 : index
    %c0_140 = arith.constant 0 : index
    %c0_141 = arith.constant 0 : index
    %c0_142 = arith.constant 0 : index
    %207 = vector.load %arg16[%c0_139, %c0_140, %c0_141, %c0_142] : memref<2x3x1x32xf32, #tpu.memory_space<vmem>>, vector<1x1x1x32xf32>
    %208 = vector.shape_cast %207 : vector<1x1x1x32xf32> to vector<1x32xf32>
    %209 = vector.broadcast %208 : vector<1x32xf32> to vector<16x32xf32>
    %210 = arith.addf %206, %209 : vector<16x32xf32>
    %211 = arith.addf %172, %210 : vector<16x32xf32>
    %212 = vector.broadcast %1 : vector<16x1xf32> to vector<16x32xf32>
    %213 = arith.mulf %211, %212 : vector<16x32xf32>
    %c2_i32_143 = arith.constant 2 : i32
    %214 = vector.broadcast %c2_i32_143 : i32 to vector<16x1xi32>
    %215 = arith.cmpi sge, %4, %214 : vector<16x1xi32>
    %c2_i32_144 = arith.constant 2 : i32
    %216 = tpu.dynamic_rotate %213 by %c2_i32_144 dim 0 : vector<16x32xf32>, i32 -> vector<16x32xf32>
    %cst_145 = arith.constant 0.000000e+00 : f32
    %217 = vector.shape_cast %215 : vector<16x1xi1> to vector<16x1xi1>
    %218 = vector.broadcast %217 : vector<16x1xi1> to vector<16x32xi1>
    %219 = vector.broadcast %cst_145 : f32 to vector<16x32xf32>
    %220 = arith.select %218, %216, %219 : vector<16x32xi1>, vector<16x32xf32>
    %c14_i32_146 = arith.constant 14 : i32
    %221 = vector.broadcast %c14_i32_146 : i32 to vector<16x1xi32>
    %222 = arith.cmpi slt, %4, %221 : vector<16x1xi32>
    %c14_i32_147 = arith.constant 14 : i32
    %223 = tpu.dynamic_rotate %213 by %c14_i32_147 dim 0 : vector<16x32xf32>, i32 -> vector<16x32xf32>
    %cst_148 = arith.constant 0.000000e+00 : f32
    %224 = vector.shape_cast %222 : vector<16x1xi1> to vector<16x1xi1>
    %225 = vector.broadcast %224 : vector<16x1xi1> to vector<16x32xi1>
    %226 = vector.broadcast %cst_148 : f32 to vector<16x32xf32>
    %227 = arith.select %225, %223, %226 : vector<16x32xi1>, vector<16x32xf32>
    %c0_149 = arith.constant 0 : index
    %c3_150 = arith.constant 3 : index
    %c0_151 = arith.constant 0 : index
    %c0_152 = arith.constant 0 : index
    %228 = vector.load %arg13[%c0_149, %c3_150, %c0_151, %c0_152] : memref<2x9x32x32xf32, #tpu.memory_space<vmem>>, vector<1x1x32x32xf32>
    %229 = vector.shape_cast %228 : vector<1x1x32x32xf32> to vector<32x32xf32>
    %cst_153 = arith.constant dense<0.000000e+00> : vector<16x32xf32>
    %230 = tpu.matmul %220, %229, %cst_153 {dimension_numbers = #tpu.dot_dimension_numbers<[1], [0], [0], [1], [0, 0, 1, 1], [], []>} : vector<16x32xf32>, vector<32x32xf32>, vector<16x32xf32> -> vector<16x32xf32>
    %c0_154 = arith.constant 0 : index
    %c4_155 = arith.constant 4 : index
    %c0_156 = arith.constant 0 : index
    %c0_157 = arith.constant 0 : index
    %231 = vector.load %arg13[%c0_154, %c4_155, %c0_156, %c0_157] : memref<2x9x32x32xf32, #tpu.memory_space<vmem>>, vector<1x1x32x32xf32>
    %232 = vector.shape_cast %231 : vector<1x1x32x32xf32> to vector<32x32xf32>
    %cst_158 = arith.constant dense<0.000000e+00> : vector<16x32xf32>
    %233 = tpu.matmul %213, %232, %cst_158 {dimension_numbers = #tpu.dot_dimension_numbers<[1], [0], [0], [1], [0, 0, 1, 1], [], []>} : vector<16x32xf32>, vector<32x32xf32>, vector<16x32xf32> -> vector<16x32xf32>
    %234 = arith.addf %230, %233 : vector<16x32xf32>
    %c0_159 = arith.constant 0 : index
    %c5_160 = arith.constant 5 : index
    %c0_161 = arith.constant 0 : index
    %c0_162 = arith.constant 0 : index
    %235 = vector.load %arg13[%c0_159, %c5_160, %c0_161, %c0_162] : memref<2x9x32x32xf32, #tpu.memory_space<vmem>>, vector<1x1x32x32xf32>
    %236 = vector.shape_cast %235 : vector<1x1x32x32xf32> to vector<32x32xf32>
    %cst_163 = arith.constant dense<0.000000e+00> : vector<16x32xf32>
    %237 = tpu.matmul %227, %236, %cst_163 {dimension_numbers = #tpu.dot_dimension_numbers<[1], [0], [0], [1], [0, 0, 1, 1], [], []>} : vector<16x32xf32>, vector<32x32xf32>, vector<16x32xf32> -> vector<16x32xf32>
    %238 = arith.addf %234, %237 : vector<16x32xf32>
    %c0_164 = arith.constant 0 : index
    %c1_165 = arith.constant 1 : index
    %c0_166 = arith.constant 0 : index
    %c0_167 = arith.constant 0 : index
    %239 = vector.load %arg14[%c0_164, %c1_165, %c0_166, %c0_167] : memref<2x3x1x32xf32, #tpu.memory_space<vmem>>, vector<1x1x1x32xf32>
    %240 = vector.shape_cast %239 : vector<1x1x1x32xf32> to vector<1x32xf32>
    %241 = vector.broadcast %240 : vector<1x32xf32> to vector<16x32xf32>
    %242 = arith.addf %238, %241 : vector<16x32xf32>
    %cst_168 = arith.constant 0.000000e+00 : f32
    %243 = vector.broadcast %cst_168 : f32 to vector<16x32xf32>
    %244 = arith.maximumf %242, %243 : vector<16x32xf32>
    %c0_169 = arith.constant 0 : index
    %c1_170 = arith.constant 1 : index
    %c0_171 = arith.constant 0 : index
    %c0_172 = arith.constant 0 : index
    %245 = vector.load %arg15[%c0_169, %c1_170, %c0_171, %c0_172] : memref<2x3x32x32xf32, #tpu.memory_space<vmem>>, vector<1x1x32x32xf32>
    %246 = vector.shape_cast %245 : vector<1x1x32x32xf32> to vector<32x32xf32>
    %cst_173 = arith.constant dense<0.000000e+00> : vector<16x32xf32>
    %247 = tpu.matmul %244, %246, %cst_173 {dimension_numbers = #tpu.dot_dimension_numbers<[1], [0], [0], [1], [0, 0, 1, 1], [], []>} : vector<16x32xf32>, vector<32x32xf32>, vector<16x32xf32> -> vector<16x32xf32>
    %c0_174 = arith.constant 0 : index
    %c1_175 = arith.constant 1 : index
    %c0_176 = arith.constant 0 : index
    %c0_177 = arith.constant 0 : index
    %248 = vector.load %arg16[%c0_174, %c1_175, %c0_176, %c0_177] : memref<2x3x1x32xf32, #tpu.memory_space<vmem>>, vector<1x1x1x32xf32>
    %249 = vector.shape_cast %248 : vector<1x1x1x32xf32> to vector<1x32xf32>
    %250 = vector.broadcast %249 : vector<1x32xf32> to vector<16x32xf32>
    %251 = arith.addf %247, %250 : vector<16x32xf32>
    %252 = arith.addf %213, %251 : vector<16x32xf32>
    %253 = vector.broadcast %1 : vector<16x1xf32> to vector<16x32xf32>
    %254 = arith.mulf %252, %253 : vector<16x32xf32>
    %c4_i32_178 = arith.constant 4 : i32
    %255 = vector.broadcast %c4_i32_178 : i32 to vector<16x1xi32>
    %256 = arith.cmpi sge, %4, %255 : vector<16x1xi32>
    %c4_i32_179 = arith.constant 4 : i32
    %257 = tpu.dynamic_rotate %254 by %c4_i32_179 dim 0 : vector<16x32xf32>, i32 -> vector<16x32xf32>
    %cst_180 = arith.constant 0.000000e+00 : f32
    %258 = vector.shape_cast %256 : vector<16x1xi1> to vector<16x1xi1>
    %259 = vector.broadcast %258 : vector<16x1xi1> to vector<16x32xi1>
    %260 = vector.broadcast %cst_180 : f32 to vector<16x32xf32>
    %261 = arith.select %259, %257, %260 : vector<16x32xi1>, vector<16x32xf32>
    %c12_i32_181 = arith.constant 12 : i32
    %262 = vector.broadcast %c12_i32_181 : i32 to vector<16x1xi32>
    %263 = arith.cmpi slt, %4, %262 : vector<16x1xi32>
    %c12_i32_182 = arith.constant 12 : i32
    %264 = tpu.dynamic_rotate %254 by %c12_i32_182 dim 0 : vector<16x32xf32>, i32 -> vector<16x32xf32>
    %cst_183 = arith.constant 0.000000e+00 : f32
    %265 = vector.shape_cast %263 : vector<16x1xi1> to vector<16x1xi1>
    %266 = vector.broadcast %265 : vector<16x1xi1> to vector<16x32xi1>
    %267 = vector.broadcast %cst_183 : f32 to vector<16x32xf32>
    %268 = arith.select %266, %264, %267 : vector<16x32xi1>, vector<16x32xf32>
    %c0_184 = arith.constant 0 : index
    %c6_185 = arith.constant 6 : index
    %c0_186 = arith.constant 0 : index
    %c0_187 = arith.constant 0 : index
    %269 = vector.load %arg13[%c0_184, %c6_185, %c0_186, %c0_187] : memref<2x9x32x32xf32, #tpu.memory_space<vmem>>, vector<1x1x32x32xf32>
    %270 = vector.shape_cast %269 : vector<1x1x32x32xf32> to vector<32x32xf32>
    %cst_188 = arith.constant dense<0.000000e+00> : vector<16x32xf32>
    %271 = tpu.matmul %261, %270, %cst_188 {dimension_numbers = #tpu.dot_dimension_numbers<[1], [0], [0], [1], [0, 0, 1, 1], [], []>} : vector<16x32xf32>, vector<32x32xf32>, vector<16x32xf32> -> vector<16x32xf32>
    %c0_189 = arith.constant 0 : index
    %c7_190 = arith.constant 7 : index
    %c0_191 = arith.constant 0 : index
    %c0_192 = arith.constant 0 : index
    %272 = vector.load %arg13[%c0_189, %c7_190, %c0_191, %c0_192] : memref<2x9x32x32xf32, #tpu.memory_space<vmem>>, vector<1x1x32x32xf32>
    %273 = vector.shape_cast %272 : vector<1x1x32x32xf32> to vector<32x32xf32>
    %cst_193 = arith.constant dense<0.000000e+00> : vector<16x32xf32>
    %274 = tpu.matmul %254, %273, %cst_193 {dimension_numbers = #tpu.dot_dimension_numbers<[1], [0], [0], [1], [0, 0, 1, 1], [], []>} : vector<16x32xf32>, vector<32x32xf32>, vector<16x32xf32> -> vector<16x32xf32>
    %275 = arith.addf %271, %274 : vector<16x32xf32>
    %c0_194 = arith.constant 0 : index
    %c8_195 = arith.constant 8 : index
    %c0_196 = arith.constant 0 : index
    %c0_197 = arith.constant 0 : index
    %276 = vector.load %arg13[%c0_194, %c8_195, %c0_196, %c0_197] : memref<2x9x32x32xf32, #tpu.memory_space<vmem>>, vector<1x1x32x32xf32>
    %277 = vector.shape_cast %276 : vector<1x1x32x32xf32> to vector<32x32xf32>
    %cst_198 = arith.constant dense<0.000000e+00> : vector<16x32xf32>
    %278 = tpu.matmul %268, %277, %cst_198 {dimension_numbers = #tpu.dot_dimension_numbers<[1], [0], [0], [1], [0, 0, 1, 1], [], []>} : vector<16x32xf32>, vector<32x32xf32>, vector<16x32xf32> -> vector<16x32xf32>
    %279 = arith.addf %275, %278 : vector<16x32xf32>
    %c0_199 = arith.constant 0 : index
    %c2_200 = arith.constant 2 : index
    %c0_201 = arith.constant 0 : index
    %c0_202 = arith.constant 0 : index
    %280 = vector.load %arg14[%c0_199, %c2_200, %c0_201, %c0_202] : memref<2x3x1x32xf32, #tpu.memory_space<vmem>>, vector<1x1x1x32xf32>
    %281 = vector.shape_cast %280 : vector<1x1x1x32xf32> to vector<1x32xf32>
    %282 = vector.broadcast %281 : vector<1x32xf32> to vector<16x32xf32>
    %283 = arith.addf %279, %282 : vector<16x32xf32>
    %cst_203 = arith.constant 0.000000e+00 : f32
    %284 = vector.broadcast %cst_203 : f32 to vector<16x32xf32>
    %285 = arith.maximumf %283, %284 : vector<16x32xf32>
    %c0_204 = arith.constant 0 : index
    %c2_205 = arith.constant 2 : index
    %c0_206 = arith.constant 0 : index
    %c0_207 = arith.constant 0 : index
    %286 = vector.load %arg15[%c0_204, %c2_205, %c0_206, %c0_207] : memref<2x3x32x32xf32, #tpu.memory_space<vmem>>, vector<1x1x32x32xf32>
    %287 = vector.shape_cast %286 : vector<1x1x32x32xf32> to vector<32x32xf32>
    %cst_208 = arith.constant dense<0.000000e+00> : vector<16x32xf32>
    %288 = tpu.matmul %285, %287, %cst_208 {dimension_numbers = #tpu.dot_dimension_numbers<[1], [0], [0], [1], [0, 0, 1, 1], [], []>} : vector<16x32xf32>, vector<32x32xf32>, vector<16x32xf32> -> vector<16x32xf32>
    %c0_209 = arith.constant 0 : index
    %c2_210 = arith.constant 2 : index
    %c0_211 = arith.constant 0 : index
    %c0_212 = arith.constant 0 : index
    %289 = vector.load %arg16[%c0_209, %c2_210, %c0_211, %c0_212] : memref<2x3x1x32xf32, #tpu.memory_space<vmem>>, vector<1x1x1x32xf32>
    %290 = vector.shape_cast %289 : vector<1x1x1x32xf32> to vector<1x32xf32>
    %291 = vector.broadcast %290 : vector<1x32xf32> to vector<16x32xf32>
    %292 = arith.addf %288, %291 : vector<16x32xf32>
    %293 = arith.addf %254, %292 : vector<16x32xf32>
    %294 = vector.broadcast %1 : vector<16x1xf32> to vector<16x32xf32>
    %295 = arith.mulf %293, %294 : vector<16x32xf32>
    %cst_213 = arith.constant dense<0.000000e+00> : vector<16x128xf32>
    %296 = tpu.matmul %295, %167, %cst_213 {dimension_numbers = #tpu.dot_dimension_numbers<[1], [0], [0], [1], [0, 0, 1, 1], [], []>} : vector<16x32xf32>, vector<32x128xf32>, vector<16x128xf32> -> vector<16x128xf32>
    %297 = vector.broadcast %169 : vector<1x128xf32> to vector<16x128xf32>
    %298 = arith.addf %296, %297 : vector<16x128xf32>
    %299 = vector.broadcast %1 : vector<16x1xf32> to vector<16x128xf32>
    %300 = arith.mulf %298, %299 : vector<16x128xf32>
    %c0_214 = arith.constant 0 : index
    %c1_215 = arith.constant 1 : index
    %c0_216 = arith.constant 0 : index
    %c0_217 = arith.constant 0 : index
    %301 = vector.load %arg19[%c0_214, %c1_215, %c0_216, %c0_217] : memref<1x3x16x128xf32, #tpu.memory_space<vmem>>, vector<1x1x16x128xf32>
    %302 = vector.shape_cast %301 : vector<1x1x16x128xf32> to vector<16x128xf32>
    %303 = vector.shape_cast %300 : vector<16x128xf32> to vector<1x1x16x128xf32>
    tpu.vector_store %arg19[%c0_214, %c1_215, %c0_216, %c0_217], %303 {strides = array<i32>} : memref<1x3x16x128xf32, #tpu.memory_space<vmem>>, vector<1x1x16x128xf32>,
    %cst_218 = arith.constant 0xFF800000 : f32
    %304 = vector.broadcast %cst_218 : f32 to vector<16x128xf32>
    %305 = arith.select %145, %300, %304 : vector<16x128xi1>, vector<16x128xf32>
    %cst_219 = arith.constant dense<0xFF800000> : vector<16xf32>
    %306 = vector.multi_reduction <maximumf>, %305, %cst_219 [1] : vector<16x128xf32> to vector<16xf32>
    %307 = vector.shape_cast %306 : vector<16xf32> to vector<16x1xf32>
    %308 = vector.broadcast %307 : vector<16x1xf32> to vector<16x128xf32>
    %309 = arith.subf %305, %308 : vector<16x128xf32>
    %310 = math.exp %309 : vector<16x128xf32>
    %cst_220 = arith.constant 0.000000e+00 : f32
    %311 = vector.broadcast %cst_220 : f32 to vector<16x128xf32>
    %312 = arith.select %145, %310, %311 : vector<16x128xi1>, vector<16x128xf32>
    %cst_221 = arith.constant dense<0.000000e+00> : vector<16xf32>
    %313 = vector.multi_reduction <add>, %312, %cst_221 [1] : vector<16x128xf32> to vector<16xf32>
    %314 = vector.shape_cast %313 : vector<16xf32> to vector<16x1xf32>
    %315 = tpu.reciprocal %314 : vector<16x1xf32> -> vector<16x1xf32>
    %316 = vector.broadcast %315 : vector<16x1xf32> to vector<16x128xf32>
    %317 = arith.mulf %312, %316 : vector<16x128xf32>
    %318 = vector.broadcast %1 : vector<16x1xf32> to vector<16x128xf32>
    %319 = arith.mulf %317, %318 : vector<16x128xf32>
    %c1_222 = arith.constant 1 : index
    %c0_223 = arith.constant 0 : index
    %c0_224 = arith.constant 0 : index
    %320 = vector.load %arg11[%c1_222, %c0_223, %c0_224] : memref<2x128x32xf32, #tpu.memory_space<vmem>>, vector<1x128x32xf32>
    %321 = vector.shape_cast %320 : vector<1x128x32xf32> to vector<128x32xf32>
    %c1_225 = arith.constant 1 : index
    %c0_226 = arith.constant 0 : index
    %c0_227 = arith.constant 0 : index
    %322 = vector.load %arg12[%c1_225, %c0_226, %c0_227] : memref<2x1x32xf32, #tpu.memory_space<vmem>>, vector<1x1x32xf32>
    %323 = vector.shape_cast %322 : vector<1x1x32xf32> to vector<1x32xf32>
    %c1_228 = arith.constant 1 : index
    %c0_229 = arith.constant 0 : index
    %c0_230 = arith.constant 0 : index
    %324 = vector.load %arg17[%c1_228, %c0_229, %c0_230] : memref<2x32x128xf32, #tpu.memory_space<vmem>>, vector<1x32x128xf32>
    %325 = vector.shape_cast %324 : vector<1x32x128xf32> to vector<32x128xf32>
    %c1_231 = arith.constant 1 : index
    %c0_232 = arith.constant 0 : index
    %c0_233 = arith.constant 0 : index
    %326 = vector.load %arg18[%c1_231, %c0_232, %c0_233] : memref<2x1x128xf32, #tpu.memory_space<vmem>>, vector<1x1x128xf32>
    %327 = vector.shape_cast %326 : vector<1x1x128xf32> to vector<1x128xf32>
    %cst_234 = arith.constant dense<0.000000e+00> : vector<16x32xf32>
    %328 = tpu.matmul %319, %321, %cst_234 {dimension_numbers = #tpu.dot_dimension_numbers<[1], [0], [0], [1], [0, 0, 1, 1], [], []>} : vector<16x128xf32>, vector<128x32xf32>, vector<16x32xf32> -> vector<16x32xf32>
    %329 = vector.broadcast %323 : vector<1x32xf32> to vector<16x32xf32>
    %330 = arith.addf %328, %329 : vector<16x32xf32>
    %c1_i32_235 = arith.constant 1 : i32
    %331 = vector.broadcast %c1_i32_235 : i32 to vector<16x1xi32>
    %332 = arith.cmpi sge, %4, %331 : vector<16x1xi32>
    %c1_i32_236 = arith.constant 1 : i32
    %333 = tpu.dynamic_rotate %330 by %c1_i32_236 dim 0 : vector<16x32xf32>, i32 -> vector<16x32xf32>
    %cst_237 = arith.constant 0.000000e+00 : f32
    %334 = vector.shape_cast %332 : vector<16x1xi1> to vector<16x1xi1>
    %335 = vector.broadcast %334 : vector<16x1xi1> to vector<16x32xi1>
    %336 = vector.broadcast %cst_237 : f32 to vector<16x32xf32>
    %337 = arith.select %335, %333, %336 : vector<16x32xi1>, vector<16x32xf32>
    %c15_i32_238 = arith.constant 15 : i32
    %338 = vector.broadcast %c15_i32_238 : i32 to vector<16x1xi32>
    %339 = arith.cmpi slt, %4, %338 : vector<16x1xi32>
    %c15_i32_239 = arith.constant 15 : i32
    %340 = tpu.dynamic_rotate %330 by %c15_i32_239 dim 0 : vector<16x32xf32>, i32 -> vector<16x32xf32>
    %cst_240 = arith.constant 0.000000e+00 : f32
    %341 = vector.shape_cast %339 : vector<16x1xi1> to vector<16x1xi1>
    %342 = vector.broadcast %341 : vector<16x1xi1> to vector<16x32xi1>
    %343 = vector.broadcast %cst_240 : f32 to vector<16x32xf32>
    %344 = arith.select %342, %340, %343 : vector<16x32xi1>, vector<16x32xf32>
    %c1_241 = arith.constant 1 : index
    %c0_242 = arith.constant 0 : index
    %c0_243 = arith.constant 0 : index
    %c0_244 = arith.constant 0 : index
    %345 = vector.load %arg13[%c1_241, %c0_242, %c0_243, %c0_244] : memref<2x9x32x32xf32, #tpu.memory_space<vmem>>, vector<1x1x32x32xf32>
    %346 = vector.shape_cast %345 : vector<1x1x32x32xf32> to vector<32x32xf32>
    %cst_245 = arith.constant dense<0.000000e+00> : vector<16x32xf32>
    %347 = tpu.matmul %337, %346, %cst_245 {dimension_numbers = #tpu.dot_dimension_numbers<[1], [0], [0], [1], [0, 0, 1, 1], [], []>} : vector<16x32xf32>, vector<32x32xf32>, vector<16x32xf32> -> vector<16x32xf32>
    %c1_246 = arith.constant 1 : index
    %c1_247 = arith.constant 1 : index
    %c0_248 = arith.constant 0 : index
    %c0_249 = arith.constant 0 : index
    %348 = vector.load %arg13[%c1_246, %c1_247, %c0_248, %c0_249] : memref<2x9x32x32xf32, #tpu.memory_space<vmem>>, vector<1x1x32x32xf32>
    %349 = vector.shape_cast %348 : vector<1x1x32x32xf32> to vector<32x32xf32>
    %cst_250 = arith.constant dense<0.000000e+00> : vector<16x32xf32>
    %350 = tpu.matmul %330, %349, %cst_250 {dimension_numbers = #tpu.dot_dimension_numbers<[1], [0], [0], [1], [0, 0, 1, 1], [], []>} : vector<16x32xf32>, vector<32x32xf32>, vector<16x32xf32> -> vector<16x32xf32>
    %351 = arith.addf %347, %350 : vector<16x32xf32>
    %c1_251 = arith.constant 1 : index
    %c2_252 = arith.constant 2 : index
    %c0_253 = arith.constant 0 : index
    %c0_254 = arith.constant 0 : index
    %352 = vector.load %arg13[%c1_251, %c2_252, %c0_253, %c0_254] : memref<2x9x32x32xf32, #tpu.memory_space<vmem>>, vector<1x1x32x32xf32>
    %353 = vector.shape_cast %352 : vector<1x1x32x32xf32> to vector<32x32xf32>
    %cst_255 = arith.constant dense<0.000000e+00> : vector<16x32xf32>
    %354 = tpu.matmul %344, %353, %cst_255 {dimension_numbers = #tpu.dot_dimension_numbers<[1], [0], [0], [1], [0, 0, 1, 1], [], []>} : vector<16x32xf32>, vector<32x32xf32>, vector<16x32xf32> -> vector<16x32xf32>
    %355 = arith.addf %351, %354 : vector<16x32xf32>
    %c1_256 = arith.constant 1 : index
    %c0_257 = arith.constant 0 : index
    %c0_258 = arith.constant 0 : index
    %c0_259 = arith.constant 0 : index
    %356 = vector.load %arg14[%c1_256, %c0_257, %c0_258, %c0_259] : memref<2x3x1x32xf32, #tpu.memory_space<vmem>>, vector<1x1x1x32xf32>
    %357 = vector.shape_cast %356 : vector<1x1x1x32xf32> to vector<1x32xf32>
    %358 = vector.broadcast %357 : vector<1x32xf32> to vector<16x32xf32>
    %359 = arith.addf %355, %358 : vector<16x32xf32>
    %cst_260 = arith.constant 0.000000e+00 : f32
    %360 = vector.broadcast %cst_260 : f32 to vector<16x32xf32>
    %361 = arith.maximumf %359, %360 : vector<16x32xf32>
    %c1_261 = arith.constant 1 : index
    %c0_262 = arith.constant 0 : index
    %c0_263 = arith.constant 0 : index
    %c0_264 = arith.constant 0 : index
    %362 = vector.load %arg15[%c1_261, %c0_262, %c0_263, %c0_264] : memref<2x3x32x32xf32, #tpu.memory_space<vmem>>, vector<1x1x32x32xf32>
    %363 = vector.shape_cast %362 : vector<1x1x32x32xf32> to vector<32x32xf32>
    %cst_265 = arith.constant dense<0.000000e+00> : vector<16x32xf32>
    %364 = tpu.matmul %361, %363, %cst_265 {dimension_numbers = #tpu.dot_dimension_numbers<[1], [0], [0], [1], [0, 0, 1, 1], [], []>} : vector<16x32xf32>, vector<32x32xf32>, vector<16x32xf32> -> vector<16x32xf32>
    %c1_266 = arith.constant 1 : index
    %c0_267 = arith.constant 0 : index
    %c0_268 = arith.constant 0 : index
    %c0_269 = arith.constant 0 : index
    %365 = vector.load %arg16[%c1_266, %c0_267, %c0_268, %c0_269] : memref<2x3x1x32xf32, #tpu.memory_space<vmem>>, vector<1x1x1x32xf32>
    %366 = vector.shape_cast %365 : vector<1x1x1x32xf32> to vector<1x32xf32>
    %367 = vector.broadcast %366 : vector<1x32xf32> to vector<16x32xf32>
    %368 = arith.addf %364, %367 : vector<16x32xf32>
    %369 = arith.addf %330, %368 : vector<16x32xf32>
    %370 = vector.broadcast %1 : vector<16x1xf32> to vector<16x32xf32>
    %371 = arith.mulf %369, %370 : vector<16x32xf32>
    %c2_i32_270 = arith.constant 2 : i32
    %372 = vector.broadcast %c2_i32_270 : i32 to vector<16x1xi32>
    %373 = arith.cmpi sge, %4, %372 : vector<16x1xi32>
    %c2_i32_271 = arith.constant 2 : i32
    %374 = tpu.dynamic_rotate %371 by %c2_i32_271 dim 0 : vector<16x32xf32>, i32 -> vector<16x32xf32>
    %cst_272 = arith.constant 0.000000e+00 : f32
    %375 = vector.shape_cast %373 : vector<16x1xi1> to vector<16x1xi1>
    %376 = vector.broadcast %375 : vector<16x1xi1> to vector<16x32xi1>
    %377 = vector.broadcast %cst_272 : f32 to vector<16x32xf32>
    %378 = arith.select %376, %374, %377 : vector<16x32xi1>, vector<16x32xf32>
    %c14_i32_273 = arith.constant 14 : i32
    %379 = vector.broadcast %c14_i32_273 : i32 to vector<16x1xi32>
    %380 = arith.cmpi slt, %4, %379 : vector<16x1xi32>
    %c14_i32_274 = arith.constant 14 : i32
    %381 = tpu.dynamic_rotate %371 by %c14_i32_274 dim 0 : vector<16x32xf32>, i32 -> vector<16x32xf32>
    %cst_275 = arith.constant 0.000000e+00 : f32
    %382 = vector.shape_cast %380 : vector<16x1xi1> to vector<16x1xi1>
    %383 = vector.broadcast %382 : vector<16x1xi1> to vector<16x32xi1>
    %384 = vector.broadcast %cst_275 : f32 to vector<16x32xf32>
    %385 = arith.select %383, %381, %384 : vector<16x32xi1>, vector<16x32xf32>
    %c1_276 = arith.constant 1 : index
    %c3_277 = arith.constant 3 : index
    %c0_278 = arith.constant 0 : index
    %c0_279 = arith.constant 0 : index
    %386 = vector.load %arg13[%c1_276, %c3_277, %c0_278, %c0_279] : memref<2x9x32x32xf32, #tpu.memory_space<vmem>>, vector<1x1x32x32xf32>
    %387 = vector.shape_cast %386 : vector<1x1x32x32xf32> to vector<32x32xf32>
    %cst_280 = arith.constant dense<0.000000e+00> : vector<16x32xf32>
    %388 = tpu.matmul %378, %387, %cst_280 {dimension_numbers = #tpu.dot_dimension_numbers<[1], [0], [0], [1], [0, 0, 1, 1], [], []>} : vector<16x32xf32>, vector<32x32xf32>, vector<16x32xf32> -> vector<16x32xf32>
    %c1_281 = arith.constant 1 : index
    %c4_282 = arith.constant 4 : index
    %c0_283 = arith.constant 0 : index
    %c0_284 = arith.constant 0 : index
    %389 = vector.load %arg13[%c1_281, %c4_282, %c0_283, %c0_284] : memref<2x9x32x32xf32, #tpu.memory_space<vmem>>, vector<1x1x32x32xf32>
    %390 = vector.shape_cast %389 : vector<1x1x32x32xf32> to vector<32x32xf32>
    %cst_285 = arith.constant dense<0.000000e+00> : vector<16x32xf32>
    %391 = tpu.matmul %371, %390, %cst_285 {dimension_numbers = #tpu.dot_dimension_numbers<[1], [0], [0], [1], [0, 0, 1, 1], [], []>} : vector<16x32xf32>, vector<32x32xf32>, vector<16x32xf32> -> vector<16x32xf32>
    %392 = arith.addf %388, %391 : vector<16x32xf32>
    %c1_286 = arith.constant 1 : index
    %c5_287 = arith.constant 5 : index
    %c0_288 = arith.constant 0 : index
    %c0_289 = arith.constant 0 : index
    %393 = vector.load %arg13[%c1_286, %c5_287, %c0_288, %c0_289] : memref<2x9x32x32xf32, #tpu.memory_space<vmem>>, vector<1x1x32x32xf32>
    %394 = vector.shape_cast %393 : vector<1x1x32x32xf32> to vector<32x32xf32>
    %cst_290 = arith.constant dense<0.000000e+00> : vector<16x32xf32>
    %395 = tpu.matmul %385, %394, %cst_290 {dimension_numbers = #tpu.dot_dimension_numbers<[1], [0], [0], [1], [0, 0, 1, 1], [], []>} : vector<16x32xf32>, vector<32x32xf32>, vector<16x32xf32> -> vector<16x32xf32>
    %396 = arith.addf %392, %395 : vector<16x32xf32>
    %c1_291 = arith.constant 1 : index
    %c1_292 = arith.constant 1 : index
    %c0_293 = arith.constant 0 : index
    %c0_294 = arith.constant 0 : index
    %397 = vector.load %arg14[%c1_291, %c1_292, %c0_293, %c0_294] : memref<2x3x1x32xf32, #tpu.memory_space<vmem>>, vector<1x1x1x32xf32>
    %398 = vector.shape_cast %397 : vector<1x1x1x32xf32> to vector<1x32xf32>
    %399 = vector.broadcast %398 : vector<1x32xf32> to vector<16x32xf32>
    %400 = arith.addf %396, %399 : vector<16x32xf32>
    %cst_295 = arith.constant 0.000000e+00 : f32
    %401 = vector.broadcast %cst_295 : f32 to vector<16x32xf32>
    %402 = arith.maximumf %400, %401 : vector<16x32xf32>
    %c1_296 = arith.constant 1 : index
    %c1_297 = arith.constant 1 : index
    %c0_298 = arith.constant 0 : index
    %c0_299 = arith.constant 0 : index
    %403 = vector.load %arg15[%c1_296, %c1_297, %c0_298, %c0_299] : memref<2x3x32x32xf32, #tpu.memory_space<vmem>>, vector<1x1x32x32xf32>
    %404 = vector.shape_cast %403 : vector<1x1x32x32xf32> to vector<32x32xf32>
    %cst_300 = arith.constant dense<0.000000e+00> : vector<16x32xf32>
    %405 = tpu.matmul %402, %404, %cst_300 {dimension_numbers = #tpu.dot_dimension_numbers<[1], [0], [0], [1], [0, 0, 1, 1], [], []>} : vector<16x32xf32>, vector<32x32xf32>, vector<16x32xf32> -> vector<16x32xf32>
    %c1_301 = arith.constant 1 : index
    %c1_302 = arith.constant 1 : index
    %c0_303 = arith.constant 0 : index
    %c0_304 = arith.constant 0 : index
    %406 = vector.load %arg16[%c1_301, %c1_302, %c0_303, %c0_304] : memref<2x3x1x32xf32, #tpu.memory_space<vmem>>, vector<1x1x1x32xf32>
    %407 = vector.shape_cast %406 : vector<1x1x1x32xf32> to vector<1x32xf32>
    %408 = vector.broadcast %407 : vector<1x32xf32> to vector<16x32xf32>
    %409 = arith.addf %405, %408 : vector<16x32xf32>
    %410 = arith.addf %371, %409 : vector<16x32xf32>
    %411 = vector.broadcast %1 : vector<16x1xf32> to vector<16x32xf32>
    %412 = arith.mulf %410, %411 : vector<16x32xf32>
    %c4_i32_305 = arith.constant 4 : i32
    %413 = vector.broadcast %c4_i32_305 : i32 to vector<16x1xi32>
    %414 = arith.cmpi sge, %4, %413 : vector<16x1xi32>
    %c4_i32_306 = arith.constant 4 : i32
    %415 = tpu.dynamic_rotate %412 by %c4_i32_306 dim 0 : vector<16x32xf32>, i32 -> vector<16x32xf32>
    %cst_307 = arith.constant 0.000000e+00 : f32
    %416 = vector.shape_cast %414 : vector<16x1xi1> to vector<16x1xi1>
    %417 = vector.broadcast %416 : vector<16x1xi1> to vector<16x32xi1>
    %418 = vector.broadcast %cst_307 : f32 to vector<16x32xf32>
    %419 = arith.select %417, %415, %418 : vector<16x32xi1>, vector<16x32xf32>
    %c12_i32_308 = arith.constant 12 : i32
    %420 = vector.broadcast %c12_i32_308 : i32 to vector<16x1xi32>
    %421 = arith.cmpi slt, %4, %420 : vector<16x1xi32>
    %c12_i32_309 = arith.constant 12 : i32
    %422 = tpu.dynamic_rotate %412 by %c12_i32_309 dim 0 : vector<16x32xf32>, i32 -> vector<16x32xf32>
    %cst_310 = arith.constant 0.000000e+00 : f32
    %423 = vector.shape_cast %421 : vector<16x1xi1> to vector<16x1xi1>
    %424 = vector.broadcast %423 : vector<16x1xi1> to vector<16x32xi1>
    %425 = vector.broadcast %cst_310 : f32 to vector<16x32xf32>
    %426 = arith.select %424, %422, %425 : vector<16x32xi1>, vector<16x32xf32>
    %c1_311 = arith.constant 1 : index
    %c6_312 = arith.constant 6 : index
    %c0_313 = arith.constant 0 : index
    %c0_314 = arith.constant 0 : index
    %427 = vector.load %arg13[%c1_311, %c6_312, %c0_313, %c0_314] : memref<2x9x32x32xf32, #tpu.memory_space<vmem>>, vector<1x1x32x32xf32>
    %428 = vector.shape_cast %427 : vector<1x1x32x32xf32> to vector<32x32xf32>
    %cst_315 = arith.constant dense<0.000000e+00> : vector<16x32xf32>
    %429 = tpu.matmul %419, %428, %cst_315 {dimension_numbers = #tpu.dot_dimension_numbers<[1], [0], [0], [1], [0, 0, 1, 1], [], []>} : vector<16x32xf32>, vector<32x32xf32>, vector<16x32xf32> -> vector<16x32xf32>
    %c1_316 = arith.constant 1 : index
    %c7_317 = arith.constant 7 : index
    %c0_318 = arith.constant 0 : index
    %c0_319 = arith.constant 0 : index
    %430 = vector.load %arg13[%c1_316, %c7_317, %c0_318, %c0_319] : memref<2x9x32x32xf32, #tpu.memory_space<vmem>>, vector<1x1x32x32xf32>
    %431 = vector.shape_cast %430 : vector<1x1x32x32xf32> to vector<32x32xf32>
    %cst_320 = arith.constant dense<0.000000e+00> : vector<16x32xf32>
    %432 = tpu.matmul %412, %431, %cst_320 {dimension_numbers = #tpu.dot_dimension_numbers<[1], [0], [0], [1], [0, 0, 1, 1], [], []>} : vector<16x32xf32>, vector<32x32xf32>, vector<16x32xf32> -> vector<16x32xf32>
    %433 = arith.addf %429, %432 : vector<16x32xf32>
    %c1_321 = arith.constant 1 : index
    %c8_322 = arith.constant 8 : index
    %c0_323 = arith.constant 0 : index
    %c0_324 = arith.constant 0 : index
    %434 = vector.load %arg13[%c1_321, %c8_322, %c0_323, %c0_324] : memref<2x9x32x32xf32, #tpu.memory_space<vmem>>, vector<1x1x32x32xf32>
    %435 = vector.shape_cast %434 : vector<1x1x32x32xf32> to vector<32x32xf32>
    %cst_325 = arith.constant dense<0.000000e+00> : vector<16x32xf32>
    %436 = tpu.matmul %426, %435, %cst_325 {dimension_numbers = #tpu.dot_dimension_numbers<[1], [0], [0], [1], [0, 0, 1, 1], [], []>} : vector<16x32xf32>, vector<32x32xf32>, vector<16x32xf32> -> vector<16x32xf32>
    %437 = arith.addf %433, %436 : vector<16x32xf32>
    %c1_326 = arith.constant 1 : index
    %c2_327 = arith.constant 2 : index
    %c0_328 = arith.constant 0 : index
    %c0_329 = arith.constant 0 : index
    %438 = vector.load %arg14[%c1_326, %c2_327, %c0_328, %c0_329] : memref<2x3x1x32xf32, #tpu.memory_space<vmem>>, vector<1x1x1x32xf32>
    %439 = vector.shape_cast %438 : vector<1x1x1x32xf32> to vector<1x32xf32>
    %440 = vector.broadcast %439 : vector<1x32xf32> to vector<16x32xf32>
    %441 = arith.addf %437, %440 : vector<16x32xf32>
    %cst_330 = arith.constant 0.000000e+00 : f32
    %442 = vector.broadcast %cst_330 : f32 to vector<16x32xf32>
    %443 = arith.maximumf %441, %442 : vector<16x32xf32>
    %c1_331 = arith.constant 1 : index
    %c2_332 = arith.constant 2 : index
    %c0_333 = arith.constant 0 : index
    %c0_334 = arith.constant 0 : index
    %444 = vector.load %arg15[%c1_331, %c2_332, %c0_333, %c0_334] : memref<2x3x32x32xf32, #tpu.memory_space<vmem>>, vector<1x1x32x32xf32>
    %445 = vector.shape_cast %444 : vector<1x1x32x32xf32> to vector<32x32xf32>
    %cst_335 = arith.constant dense<0.000000e+00> : vector<16x32xf32>
    %446 = tpu.matmul %443, %445, %cst_335 {dimension_numbers = #tpu.dot_dimension_numbers<[1], [0], [0], [1], [0, 0, 1, 1], [], []>} : vector<16x32xf32>, vector<32x32xf32>, vector<16x32xf32> -> vector<16x32xf32>
    %c1_336 = arith.constant 1 : index
    %c2_337 = arith.constant 2 : index
    %c0_338 = arith.constant 0 : index
    %c0_339 = arith.constant 0 : index
    %447 = vector.load %arg16[%c1_336, %c2_337, %c0_338, %c0_339] : memref<2x3x1x32xf32, #tpu.memory_space<vmem>>, vector<1x1x1x32xf32>
    %448 = vector.shape_cast %447 : vector<1x1x1x32xf32> to vector<1x32xf32>
    %449 = vector.broadcast %448 : vector<1x32xf32> to vector<16x32xf32>
    %450 = arith.addf %446, %449 : vector<16x32xf32>
    %451 = arith.addf %412, %450 : vector<16x32xf32>
    %452 = vector.broadcast %1 : vector<16x1xf32> to vector<16x32xf32>
    %453 = arith.mulf %451, %452 : vector<16x32xf32>
    %cst_340 = arith.constant dense<0.000000e+00> : vector<16x128xf32>
    %454 = tpu.matmul %453, %325, %cst_340 {dimension_numbers = #tpu.dot_dimension_numbers<[1], [0], [0], [1], [0, 0, 1, 1], [], []>} : vector<16x32xf32>, vector<32x128xf32>, vector<16x128xf32> -> vector<16x128xf32>
    %455 = vector.broadcast %327 : vector<1x128xf32> to vector<16x128xf32>
    %456 = arith.addf %454, %455 : vector<16x128xf32>
    %457 = vector.broadcast %1 : vector<16x1xf32> to vector<16x128xf32>
    %458 = arith.mulf %456, %457 : vector<16x128xf32>
    %c0_341 = arith.constant 0 : index
    %c2_342 = arith.constant 2 : index
    %c0_343 = arith.constant 0 : index
    %c0_344 = arith.constant 0 : index
    %459 = vector.load %arg19[%c0_341, %c2_342, %c0_343, %c0_344] : memref<1x3x16x128xf32, #tpu.memory_space<vmem>>, vector<1x1x16x128xf32>
    %460 = vector.shape_cast %459 : vector<1x1x16x128xf32> to vector<16x128xf32>
    %461 = vector.shape_cast %458 : vector<16x128xf32> to vector<1x1x16x128xf32>
    tpu.vector_store %arg19[%c0_341, %c2_342, %c0_343, %c0_344], %461 {strides = array<i32>} : memref<1x3x16x128xf32, #tpu.memory_space<vmem>>, vector<1x1x16x128xf32>,
    return
  }
  func.func @transform_0(%arg0: i32) -> (i32, i32, i32) {
    %c0_i32 = arith.constant 0 : i32
    %c0_i32_0 = arith.constant 0 : i32
    %c0_i32_1 = arith.constant 0 : i32
    return %arg0, %c0_i32, %c0_i32_0 : i32, i32, i32
  }
  func.func @transform_1(%arg0: i32) -> (i32, i32, i32) {
    %c0_i32 = arith.constant 0 : i32
    %c0_i32_0 = arith.constant 0 : i32
    %c0_i32_1 = arith.constant 0 : i32
    return %arg0, %c0_i32, %c0_i32_0 : i32, i32, i32
  }
  func.func @transform_2(%arg0: i32) -> (i32, i32) {
    %c0_i32 = arith.constant 0 : i32
    %c0_i32_0 = arith.constant 0 : i32
    %c0_i32_1 = arith.constant 0 : i32
    return %c0_i32, %c0_i32_0 : i32, i32
  }
  func.func @transform_3(%arg0: i32) -> (i32, i32) {
    %c0_i32 = arith.constant 0 : i32
    %c0_i32_0 = arith.constant 0 : i32
    %c0_i32_1 = arith.constant 0 : i32
    return %c0_i32, %c0_i32_0 : i32, i32
  }
  func.func @transform_4(%arg0: i32) -> (i32, i32, i32) {
    %c0_i32 = arith.constant 0 : i32
    %c0_i32_0 = arith.constant 0 : i32
    %c0_i32_1 = arith.constant 0 : i32
    %c0_i32_2 = arith.constant 0 : i32
    return %c0_i32, %c0_i32_0, %c0_i32_1 : i32, i32, i32
  }
  func.func @transform_5(%arg0: i32) -> (i32, i32, i32) {
    %c0_i32 = arith.constant 0 : i32
    %c0_i32_0 = arith.constant 0 : i32
    %c0_i32_1 = arith.constant 0 : i32
    %c0_i32_2 = arith.constant 0 : i32
    return %c0_i32, %c0_i32_0, %c0_i32_1 : i32, i32, i32
  }
  func.func @transform_6(%arg0: i32) -> (i32, i32, i32) {
    %c0_i32 = arith.constant 0 : i32
    %c0_i32_0 = arith.constant 0 : i32
    %c0_i32_1 = arith.constant 0 : i32
    %c0_i32_2 = arith.constant 0 : i32
    return %c0_i32, %c0_i32_0, %c0_i32_1 : i32, i32, i32
  }
  func.func @transform_7(%arg0: i32) -> (i32, i32, i32) {
    %c0_i32 = arith.constant 0 : i32
    %c0_i32_0 = arith.constant 0 : i32
    %c0_i32_1 = arith.constant 0 : i32
    %c0_i32_2 = arith.constant 0 : i32
    return %c0_i32, %c0_i32_0, %c0_i32_1 : i32, i32, i32
  }
  func.func @transform_8(%arg0: i32) -> (i32, i32) {
    %c0_i32 = arith.constant 0 : i32
    %c0_i32_0 = arith.constant 0 : i32
    %c0_i32_1 = arith.constant 0 : i32
    return %c0_i32, %c0_i32_0 : i32, i32
  }
  func.func @transform_9(%arg0: i32) -> (i32, i32) {
    %c0_i32 = arith.constant 0 : i32
    %c0_i32_0 = arith.constant 0 : i32
    %c0_i32_1 = arith.constant 0 : i32
    return %c0_i32, %c0_i32_0 : i32, i32
  }
  func.func @transform_10(%arg0: i32) -> (i32, i32, i32) {
    %c0_i32 = arith.constant 0 : i32
    %c0_i32_0 = arith.constant 0 : i32
    %c0_i32_1 = arith.constant 0 : i32
    %c0_i32_2 = arith.constant 0 : i32
    return %c0_i32, %c0_i32_0, %c0_i32_1 : i32, i32, i32
  }
  func.func @transform_11(%arg0: i32) -> (i32, i32, i32) {
    %c0_i32 = arith.constant 0 : i32
    %c0_i32_0 = arith.constant 0 : i32
    %c0_i32_1 = arith.constant 0 : i32
    %c0_i32_2 = arith.constant 0 : i32
    return %c0_i32, %c0_i32_0, %c0_i32_1 : i32, i32, i32
  }
  func.func @transform_12(%arg0: i32) -> (i32, i32, i32, i32) {
    %c0_i32 = arith.constant 0 : i32
    %c0_i32_0 = arith.constant 0 : i32
    %c0_i32_1 = arith.constant 0 : i32
    %c0_i32_2 = arith.constant 0 : i32
    %c0_i32_3 = arith.constant 0 : i32
    return %c0_i32, %c0_i32_0, %c0_i32_1, %c0_i32_2 : i32, i32, i32, i32
  }
  func.func @transform_13(%arg0: i32) -> (i32, i32, i32, i32) {
    %c0_i32 = arith.constant 0 : i32
    %c0_i32_0 = arith.constant 0 : i32
    %c0_i32_1 = arith.constant 0 : i32
    %c0_i32_2 = arith.constant 0 : i32
    %c0_i32_3 = arith.constant 0 : i32
    return %c0_i32, %c0_i32_0, %c0_i32_1, %c0_i32_2 : i32, i32, i32, i32
  }
  func.func @transform_14(%arg0: i32) -> (i32, i32, i32, i32) {
    %c0_i32 = arith.constant 0 : i32
    %c0_i32_0 = arith.constant 0 : i32
    %c0_i32_1 = arith.constant 0 : i32
    %c0_i32_2 = arith.constant 0 : i32
    %c0_i32_3 = arith.constant 0 : i32
    return %c0_i32, %c0_i32_0, %c0_i32_1, %c0_i32_2 : i32, i32, i32, i32
  }
  func.func @transform_15(%arg0: i32) -> (i32, i32, i32, i32) {
    %c0_i32 = arith.constant 0 : i32
    %c0_i32_0 = arith.constant 0 : i32
    %c0_i32_1 = arith.constant 0 : i32
    %c0_i32_2 = arith.constant 0 : i32
    %c0_i32_3 = arith.constant 0 : i32
    return %c0_i32, %c0_i32_0, %c0_i32_1, %c0_i32_2 : i32, i32, i32, i32
  }
  func.func @transform_16(%arg0: i32) -> (i32, i32, i32) {
    %c0_i32 = arith.constant 0 : i32
    %c0_i32_0 = arith.constant 0 : i32
    %c0_i32_1 = arith.constant 0 : i32
    %c0_i32_2 = arith.constant 0 : i32
    return %c0_i32, %c0_i32_0, %c0_i32_1 : i32, i32, i32
  }
  func.func @transform_17(%arg0: i32) -> (i32, i32, i32) {
    %c0_i32 = arith.constant 0 : i32
    %c0_i32_0 = arith.constant 0 : i32
    %c0_i32_1 = arith.constant 0 : i32
    %c0_i32_2 = arith.constant 0 : i32
    return %c0_i32, %c0_i32_0, %c0_i32_1 : i32, i32, i32
  }
  func.func @transform_18(%arg0: i32) -> (i32, i32, i32, i32) {
    %c0_i32 = arith.constant 0 : i32
    %c0_i32_0 = arith.constant 0 : i32
    %c0_i32_1 = arith.constant 0 : i32
    %c0_i32_2 = arith.constant 0 : i32
    return %arg0, %c0_i32, %c0_i32_0, %c0_i32_1 : i32, i32, i32, i32
  }
}

</mosaic_0001>

<bundles_post_ra>
// kernel: multi_stage_forward.1
= control target key start
LH: loop header
LB: loop body
LE: loop exit
PB: predicated region body
PF: predicated region fallthrough
CT: control target
= control target key end

     0   :  { %s6377_s27 = smov 0   ;;  %s7367_s0 = inlined_call_operand.vmem [shape: f32[2,16,8], index: 0, kind: input, shape index: {}]   ;;  %s7368_s1 = inlined_call_operand.vmem [shape: f32[2,16,1], index: 1, kind: input, shape index: {}]   ;;  %s7369_s2 = inlined_call_operand.vmem [shape: f32[8,32], index: 2, kind: input, shape index: {}]   ;;  %s7370_s3 = inlined_call_operand.vmem [shape: f32[1,32], index: 3, kind: input, shape index: {}]   ;;  %s7371_s4 = inlined_call_operand.vmem [shape: f32[9,32,32], index: 4, kind: input, shape index: {}]   ;;  %s7372_s5 = inlined_call_operand.vmem [shape: f32[3,1,32], index: 5, kind: input, shape index: {}]   ;;  %s7373_s6 = inlined_call_operand.vmem [shape: f32[3,32,32], index: 6, kind: input, shape index: {}]   ;;  %s7374_s7 = inlined_call_operand.vmem [shape: f32[3,1,32], index: 7, kind: input, shape index: {}]   ;;  %s7375_s8 = inlined_call_operand.vmem [shape: f32[32,128], index: 8, kind: input, shape index: {}]   ;;  %s7376_s9 = inlined_call_operand.vmem [shape: f32[1,128], index: 9, kind: input, shape index: {}]   ;;  %s7377_s10 = inlined_call_operand.vmem [shape: f32[2,128,32], index: 10, kind: input, shape index: {}]   ;;  %s7378_s11 = inlined_call_operand.vmem [shape: f32[2,1,32], index: 11, kind: input, shape index: {}]   ;;  %s7379_s12 = inlined_call_operand.vmem [shape: f32[2,9,32,32], index: 12, kind: input, shape index: {}]   ;;  %s7380_s13 = inlined_call_operand.vmem [shape: f32[2,3,1,32], index: 13, kind: input, shape index: {}]   ;;  %s7381_s14 = inlined_call_operand.vmem [shape: f32[2,3,32,32], index: 14, kind: input, shape index: {}]   ;;  %s7382_s15 = inlined_call_operand.vmem [shape: f32[2,3,1,32], index: 15, kind: input, shape index: {}]   ;;  %s7383_s16 = inlined_call_operand.vmem [shape: f32[2,32,128], index: 16, kind: input, shape index: {}]   ;;  %s7384_s17 = inlined_call_operand.vmem [shape: f32[2,1,128], index: 17, kind: input, shape index: {}]   ;;  %s7385_s18 = inlined_call_operand.vmem [shape: f32[2,3,16,128], index: 18, kind: output, shape index: {}]  }
   0x1   :  { %7386 = sst [smem:[#allocation2_spill]] %s7367_s0 }
   0x2   :  { %7387 = sst [smem:[#allocation3_spill]] %s7368_s1 }
   0x3   :  { %7388 = sst [smem:[#allocation4_spill]] %s7369_s2 }
   0x4 LB: > { %s4771_s28 = sadd.s32 4294967295, %s6279_s27   ;;  %p4775_p0 = scmp.ge.s32.totalorder %s6279_s27, 1  ;;  %s6279_s27 = sphi %s6377_s27, %s28_s27  }
   0x5   : > { %p522_p1 = scmp.lt.s32.totalorder %s6279_s27, 3 }
   0x7   : > { %p523_p2 = pnand %p4775_p0, %p522_p1 }
   0x8   : > { %s7389_s0 = sld [smem:[#allocation4_spill]] (!%p523_p2)  ;;  %p581_p3 = scmp.lt.s32.totalorder (!%p523_p2), %s4771_s28, 1  ;;  %v4784_v1 = vld [vmem:[%s7371_s4 + $0x20] sm:$0xff] (!%p523_p2)  ;;  %v4785_v2 = vld [vmem:[%s7371_s4 + $0x28] sm:$0xff] (!%p523_p2)  ;;  %vm616_vm0 = vcmask (!%p523_p2), 64512   ;;  %v4786_v6 = vld [vmem:[%s7371_s4 + $0x30] sm:$0xff] (!%p523_p2)  ;;  %v600_v15 = vlaneseq (!%p523_p2) }
   0x9   : > { %526 = sbr.rel (%p523_p2) target bundleno = 6047 (0x179f), region = 92  ;;  %v5834_v3 = vpack.c.bf16 (!%p523_p2), %v4785_v2, %v4784_v1  ;;  %s7390_s24 = sld [smem:[#allocation2_spill]] (!%p523_p2)  ;;  %v4787_v7 = vld [vmem:[%s7371_s4 + $0x38] sm:$0xff] (!%p523_p2)  ;;  %v724_v9 = vld [vmem:[%s7371_s4] sm:$0xff] (!%p523_p2)  ;;  %v725_v10 = vld [vmem:[%s7371_s4 + $0x8] sm:$0xff] (!%p523_p2)  ;;  %vm733_vm1 = vcmask (!%p523_p2), 261120  }
   0xa   : > { %v5838_v8 = vpack.c.bf16 (!%p523_p2), %v4787_v7, %v4786_v6  ;;  %v5842_v11 = vpack.c.bf16 (!%p523_p2), %v725_v10, %v724_v9  ;;  %v995_v12 = vld [vmem:[%s7373_s6] sm:$0xff] (!%p523_p2)  ;;  %v996_v13 = vld [vmem:[%s7373_s6 + $0x8] sm:$0xff] (!%p523_p2)  ;;  %v6424_v17 = vshrl.u32 (!%p523_p2), %v600_v15, 7  ;;  %v726_v19 = vld [vmem:[%s7371_s4 + $0x10] sm:$0xff] (!%p523_p2)  ;;  %s7391_s2 = sld [smem:[#allocation3_spill]] (!%p523_p2)  ;;  %v6281_v45 = vmov (!%p523_p2), 0  }
   0xb   : > { %5835 = vmatprep.subr.bf16.mxu1 (!%p523_p2), %v5834_v3  ;;  %v5858_v14 = vpack.c.bf16 (!%p523_p2), %v996_v13, %v995_v12  ;;  %v4781_v16 = vld [vmem:[%s7370_s3] ss:$0 sm:$0xff] (!%p523_p2)  ;;  %v727_v20 = vld [vmem:[%s7371_s4 + $0x18] sm:$0xff] (!%p523_p2)  ;;  %v4793_v28 = vld [vmem:[%s7371_s4 + $0x48] sm:$0xff] (!%p523_p2)  ;;  %6256 = vset.pattern.permute.xlu0 (!%p523_p2), %v6281_v45 }
   0xc   : > { %5837 = vmatpush3.bf16.msra.mxu1 (!%p523_p2), %v5834_v3  ;;  %v5846_v25 = vpack.c.bf16 (!%p523_p2), %v727_v20, %v726_v19  ;;  %vm702_vm2 = vcmp.lt.s32.totalorder (!%p523_p2), %v6424_v17, 1  ;;  %vm698_vm3 = vcmp.ge.s32.totalorder (!%p523_p2), %v6424_v17, 1  ;;  %v4792_v27 = vld [vmem:[%s7371_s4 + $0x40] sm:$0xff] (!%p523_p2)  ;;  %v4794_v32 = vld [vmem:[%s7371_s4 + $0x50] sm:$0xff] (!%p523_p2)  ;;  %v4795_v33 = vld [vmem:[%s7371_s4 + $0x58] sm:$0xff] (!%p523_p2)  ;;  %vm715_vm4 = vcmp.lt.s32.totalorder (!%p523_p2), %v6424_v17, 7 }
   0xd   : > { %5839 = vmatprep.subr.bf16.mxu1 (!%p523_p2), %v5838_v8  ;;  %v5850_v31 = vpack.c.bf16 (!%p523_p2), %v4793_v28, %v4792_v27  ;;  %v5854_v36 = vpack.c.bf16 (!%p523_p2), %v4795_v33, %v4794_v32  ;;  %v6470_v39 = vadd.s32 (!%p523_p2), 8, %v6424_v17  ;;  %v997_v42 = vld [vmem:[%s7373_s6 + $0x10] sm:$0xff] (!%p523_p2)  ;;  %v998_v43 = vld [vmem:[%s7373_s6 + $0x18] sm:$0xff] (!%p523_p2)  ;;  %v4798_v48 = vld [vmem:[%s7372_s5] ss:$0 sm:$0xff] (!%p523_p2)  ;;  %vm1105_vm6 = vcmp.lt.s32.totalorder (!%p523_p2), %v6424_v17, 2 }
   0xe   : > { %v603_v0 = vld [vmem:[%s7389_s0] sm:$0xff] (!%p523_p2)  ;;  %v5862_v44 = vpack.c.bf16 (!%p523_p2), %v998_v43, %v997_v42  ;;  %v4807_v56 = vld [vmem:[%s7371_s4 + $0x88] sm:$0xff] (!%p523_p2)  ;;  %v4808_v58 = vld [vmem:[%s7371_s4 + $0x90] sm:$0xff] (!%p523_p2)  ;;  %vm1101_vm7 = vcmp.ge.s32.totalorder (!%p523_p2), %v6424_v17, 2  ;;  %vm1118_vm8 = vcmp.lt.s32.totalorder (!%p523_p2), %v6424_v17, 6  ;;  %vm1501_vm10 = vcmp.lt.s32.totalorder (!%p523_p2), %v6424_v17, 4 }
   0xf   : > { %5330 = vmatprep.subr.mxu0 (!%p523_p2), %v603_v0  ;;  %vm712_vm5 = vcmp.lt.s32.totalorder (!%p523_p2), %v6470_v39, 15  ;;  %v4806_v55 = vld [vmem:[%s7371_s4 + $0x80] sm:$0xff] (!%p523_p2)  ;;  %v4809_v59 = vld [vmem:[%s7371_s4 + $0x98] sm:$0xff] (!%p523_p2)  ;;  %v4803_v62 = vld [vmem:[%s7371_s4 + $0x68] sm:$0xff] (!%p523_p2)  ;;  %vm1115_vm9 = vcmp.lt.s32.totalorder (!%p523_p2), %v6470_v39, 14  ;;  %vm1497_vm11 = vcmp.ge.s32.totalorder (!%p523_p2), %v6424_v17, 4 }
  0x10   : > { %5331 = vmatpush3.msra.mxu0 %v603_v0  ;;  %s7393_s28 = smov (!%p581_p3, %s4771_s28), 1  ;;  %5841 = vmatpush3.bf16.msra.mxu1 %v5838_v8  ;;  %v5866_v57 = vpack.c.bf16 %v4807_v56, %v4806_v55  ;;  %v5870_v60 = vpack.c.bf16 %v4809_v59, %v4808_v58  ;;  %v4802_v61 = vld [vmem:[%s7371_s4 + $0x60] sm:$0xff]  ;;  %v4823_v1 = vld [vmem:[%s7373_s6 + $0x28] sm:$0xff]  ;;  %v4804_v12 = vld [vmem:[%s7371_s4 + $0x70] sm:$0xff]  ;;  %vm1511_vm12 = vcmp.lt.s32.totalorder %v6470_v39, 12 }
  0x11   : > { %s5055_s22 = sshll.u32 %s7393_s28, 4  ;;  %5843 = vmatprep.subr.bf16.mxu1 %v5842_v11  ;;  %5859 = vmatprep.subr.bf16.mxu0 %v5858_v14  ;;  %v5874_v63 = vpack.c.bf16 %v4803_v62, %v4802_v61  ;;  %v4822_v0 = vld [vmem:[%s7373_s6 + $0x20] sm:$0xff]  ;;  %v4805_v13 = vld [vmem:[%s7371_s4 + $0x78] sm:$0xff]  ;;  %v4851_v56 = vld [vmem:[%s7373_s6 + $0x48] sm:$0xff]  ;;  %s6246_s0 = smul.u32 48, %s7393_s28 }
  0x12   : > { %s585_s25 = scalar_lea.vmem %s7390_s24, %s5055_s22  ;;  %s590_s23 = scalar_lea.vmem %s7391_s2, %s5055_s22  ;;  %v5890_v2 = vpack.c.bf16 %v4823_v1, %v4822_v0  ;;  %v4817_v27 = vld [vmem:[%s7371_s4 + $0xb8] sm:$0xff]  ;;  %v4850_v55 = vld [vmem:[%s7373_s6 + $0x40] sm:$0xff]  ;;  %v4832_v1 = vld [vmem:[%s7371_s4 + $0xd0] sm:$0xff] }
  0x13   : > { %v598_v4 = vld [vmem:[%s585_s25] sm:$0xff]  ;;  %v599_v5 = vld [vmem:[%s585_s25 + $0x8] sm:$0xff]  ;;  %s6697_s2 = scalar_lea.vmem %s7385_s18, %s6246_s0  ;;  %v5043_v17 = vld [vmem:[%s7381_s14 + $0xb8] sm:$0xff] }
  0x14   : > { %5332 = vmatprep.mubr.msk.f32.mxu0 %vm616_vm0, %v598_v4  ;;  %v596_v46 = vld [vmem:[%s590_s23] sm:$0xff]  ;;  %v597_v47 = vld [vmem:[%s590_s23 + $0x8] sm:$0xff] }
  0x15   : > { %5333 = vmatmul.mubr.msk.f32.vlgmr.msra.gmra.mrb[0].mxu0 %vm616_vm0, %v599_v5  ;;  %1091 = vperm.xlu0 %6256, %v596_v46   ;;  %v4799_v4 = vld [vmem:[%s7374_s7] ss:$0 sm:$0xff]  ;;  %v4827_v58 = vld [vmem:[%s7374_s7 + $0x1] ss:$0 sm:$0xff] }
  0x16   : > { %5861 = vmatpush3.bf16.msra.mxu0 %v5858_v14  ;;  %v4834_v46 = vld [vmem:[%s7371_s4 + $0xe0] sm:$0xff] }
  0x17   : > { %5863 = vmatprep.subr.bf16.mxu0 %v5862_v44 }
  0x19   : > { %1096 = vperm.xlu0 %6256, %v597_v47   ;;  %v4835_v47 = vld [vmem:[%s7371_s4 + $0xe8] sm:$0xff] }
  0x1a   : > { %5865 = vmatpush3.bf16.msra.mxu0 %v5862_v44 }
  0x1b   : > { %5867 = vmatprep.subr.bf16.mxu0 %v5866_v57 }
  0x94   : > { %v6519_v3 = vpop.permute.xlu0 %1091 }
  0xe8   : > { %v5334_v18 = vpop.f32.mrb[0].mxu0 }
  0xe9   : > { %v6432_v21 = vadd.f32 %v5334_v18, %v4781_v16  ;;  %v689_v22 = vpop.f32.mrb[1].mxu0  ;;  %v5878_v18 = vpack.c.bf16 %v4805_v13, %v4804_v12 }
  0xea   : > { %v6434_v23 = vadd.f32 %v4781_v16, %v689_v22  ;;  %v4815_v22 = vld [vmem:[%s7371_s4 + $0xa8] sm:$0xff] }
  0xeb   : > { %v701_v24 = vrot.slane %v6432_v21, 7  ;;  %v714_v35 = vrot.slane %v6432_v21, 1 }
  0xec   : > { %v700_v26 = vrot.slane %v6434_v23, 7  ;;  %5343 = vmatprep.mubr.msk.f32.mxu1 %vm733_vm1, %v6434_v23  ;;  %v713_v34 = vrot.slane %v6434_v23, 1 }
  0xed   : > { %5344 = vmatmul.mubr.msk.f32.vlgmr.msra.gmra.mrb[0].mxu1 %vm733_vm1, %v6432_v21 }
  0xee   : > { %5845 = vmatpush3.bf16.msra.mxu1 %v5842_v11  ;;  %v704_v29 = vsel %vm702_vm2, %v701_v24, %v700_v26  ;;  %v703_v37 = vsel %vm702_vm2, %v700_v26, %v701_v24  ;;  %v716_v38 = vsel %vm715_vm4, %v713_v34, %v714_v35  ;;  %v717_v40 = vsel %vm715_vm4, %v714_v35, %v713_v34  ;;  %v6526_v11 = vpop.permute.xlu0 %1096  ;;  %v4816_v26 = vld [vmem:[%s7371_s4 + $0xb0] sm:$0xff] }
  0xef   : > { %5847 = vmatprep.subr.bf16.mxu1 %v5846_v25  ;;  %v709_v30 = vsel %vm698_vm3, %v704_v29, 0.0  ;;  %v723_v41 = vsel %vm712_vm5, %v717_v40, 0.0  ;;  %v4824_v35 = vld [vmem:[%s7373_s6 + $0x30] sm:$0xff] }
  0xf0   : > { %5354 = vmatprep.mubr.msk.f32.mxu1 %vm733_vm1, %v709_v30  ;;  %v5886_v30 = vpack.c.bf16 %v4817_v27, %v4816_v26 }
  0xf2   : > { %5849 = vmatpush3.bf16.msra.mxu1 %v5846_v25 }
  0xf3   : > { %5851 = vmatprep.subr.bf16.mxu1 %v5850_v31 }
  0xf5   : > { %5355 = vmatmul.mubr.msk.f32.vlgmr.msra.gmra.mrb[0].mxu1 %vm733_vm1, %v703_v37 }
  0xf6   : > { %5853 = vmatpush3.bf16.msra.mxu1 %v5850_v31  ;;  %5365 = vmatprep.mubr.msk.f32.mxu1 %vm733_vm1, %v716_v38  ;;  %v4821_v38 = vld [vmem:[%s7372_s5 + $0x1] ss:$0 sm:$0xff] }
  0xf7   : > { %5855 = vmatprep.subr.bf16.mxu1 %v5854_v36 }
  0xfa   : > { %5857 = vmatpush3.bf16.msra.mxu1 %v5854_v36  ;;  %v4825_v36 = vld [vmem:[%s7373_s6 + $0x38] sm:$0xff] }
  0xfb   : > { %5891 = vmatprep.subr.bf16.mxu1 %v5890_v2  ;;  %v5894_v37 = vpack.c.bf16 %v4825_v36, %v4824_v35  ;;  %v607_v35 = vld [vmem:[%s7375_s8 + $0x10] sm:$0xff]  ;;  %v608_v36 = vld [vmem:[%s7375_s8 + $0x18] sm:$0xff] }
  0xfd   : > { %5366 = vmatmul.mubr.msk.f32.vlgmr.msra.gmra.mrb[0].mxu1 %vm733_vm1, %v723_v41 }
  0xfe   : > { %5893 = vmatpush3.bf16.msra.mxu1 %v5890_v2  ;;  %v4833_v2 = vld [vmem:[%s7371_s4 + $0xd8] sm:$0xff] }
  0xff   : > { %5895 = vmatprep.subr.bf16.mxu1 %v5894_v37 }
 0x102   : > { %5897 = vmatpush3.bf16.msra.mxu1 %v5894_v37  ;;  %v5934_v37 = vpack.c.bf16 %v608_v36, %v607_v35 }
 0x1d0   : > { %v5367_v49 = vpop.f32.mrb[0].mxu1 }
 0x1d1   : > { %v992_v50 = vadd.f32 %v5367_v49, %v4798_v48  ;;  %v973_v51 = vpop.f32.mrb[1].mxu1  ;;  %v4836_v49 = vld [vmem:[%s7371_s4 + $0xf0] sm:$0xff] }
 0x1d2   : > { %v991_v52 = vadd.f32 %v4798_v48, %v973_v51  ;;  %v5898_v48 = vpack.c.bf16 %v4835_v47, %v4834_v46 }
 0x1d3   : > { %v994_v54 = vmax.f32 %v992_v50, 0.0  ;;  %v4837_v50 = vld [vmem:[%s7371_s4 + $0xf8] sm:$0xff] }
 0x1d4   : > { %v993_v53 = vmax.f32 %v991_v52, 0.0  ;;  %5899 = vmatprep.subr.bf16.mxu1 %v5898_v48  ;;  %v5902_v51 = vpack.c.bf16 %v4837_v50, %v4836_v49  ;;  %v4830_v52 = vld [vmem:[%s7371_s4 + $0xc0] sm:$0xff]  ;;  %v6692_v49 = vand.u32 127, %v600_v15 }
 0x1d6   : > { %5376 = vmatprep.mubr.msk.f32.mxu0 %vm733_vm1, %v993_v53  ;;  %v4831_v53 = vld [vmem:[%s7371_s4 + $0xc8] sm:$0xff]  ;;  %vm1981_vm13 = vcmp.lt.s32.totalorder %v6692_v49, 6  ;;  %v4952_v49 = vld [vmem:[%s7377_s10 + $0xd8] sm:$0xff] }
 0x1d7   : > { %5377 = vmatmul.mubr.msk.f32.vlgmr.msra.gmra.mrb[2].mxu0 %vm733_vm1, %v994_v54  ;;  %v5906_v54 = vpack.c.bf16 %v4831_v53, %v4830_v52 }
 0x1d8   : > { %5869 = vmatpush3.bf16.msra.mxu0 %v5866_v57  ;;  %v5922_v57 = vpack.c.bf16 %v4851_v56, %v4850_v55 }
 0x1d9   : > { %5871 = vmatprep.subr.bf16.mxu0 %v5870_v60 }
 0x1dc   : > { %5873 = vmatpush3.bf16.msra.mxu0 %v5870_v60 }
 0x1dd   : > { %5875 = vmatprep.subr.bf16.mxu0 %v5874_v63 }
 0x2aa   : > { %v5378_v5 = vpop.f32.mrb[2].mxu0 }
 0x2ab   : > { %v1084_v6 = vadd.f32 %v5378_v5, %v4799_v4  ;;  %v1078_v7 = vpop.f32.mrb[3].mxu0 }
 0x2ac   : > { %v1079_v8 = vadd.f32 %v4799_v4, %v1078_v7 }
 0x2ad   : > { %v1088_v9 = vadd.f32 %v1084_v6, %v6432_v21  ;;  %v4814_v21 = vld [vmem:[%s7371_s4 + $0xa0] sm:$0xff]  ;;  %v5910_v6 = vpack.c.bf16 %v4833_v2, %v4832_v1  ;;  %v2012_v2 = vld [vmem:[%s7377_s10 + $0x30] sm:$0xff] }
 0x2ae   : > { %v1087_v10 = vadd.f32 %v1079_v8, %v6434_v23  ;;  %v5882_v25 = vpack.c.bf16 %v4815_v22, %v4814_v21  ;;  %v4852_v22 = vld [vmem:[%s7373_s6 + $0x50] sm:$0xff] }
 0x2af   : > { %v6535_v14 = vmul.f32 %v6526_v11, %v1088_v9  ;;  %v4842_v9 = vld [vmem:[%s7371_s4 + $0x100] sm:$0xff] }
 0x2b0   : > { %v6538_v16 = vmul.f32 %v6519_v3, %v1087_v10  ;;  %v4843_v10 = vld [vmem:[%s7371_s4 + $0x108] sm:$0xff] }
 0x2b1   : > { %v1104_v19 = vrot.slane %v6535_v14, 6  ;;  %v1117_v29 = vrot.slane %v6535_v14, 2 }
 0x2b2   : > { %5387 = vmatprep.mubr.msk.f32.mxu0 %vm733_vm1, %v6538_v16  ;;  %v1103_v20 = vrot.slane %v6538_v16, 6  ;;  %v1116_v28 = vrot.slane %v6538_v16, 2 }
 0x2b3   : > { %5388 = vmatmul.mubr.msk.f32.vlgmr.msra.gmra.mrb[4].mxu0 %vm733_vm1, %v6535_v14 }
 0x2b4   : > { %5877 = vmatpush3.bf16.msra.mxu0 %v5874_v63  ;;  %v1107_v23 = vsel %vm1105_vm6, %v1104_v19, %v1103_v20  ;;  %v1106_v31 = vsel %vm1105_vm6, %v1103_v20, %v1104_v19  ;;  %v1119_v32 = vsel %vm1118_vm8, %v1116_v28, %v1117_v29  ;;  %v1120_v33 = vsel %vm1118_vm8, %v1117_v29, %v1116_v28 }
 0x2b5   : > { %5879 = vmatprep.subr.bf16.mxu0 %v5878_v18  ;;  %v1112_v24 = vsel %vm1101_vm7, %v1107_v23, 0.0  ;;  %v1126_v34 = vsel %vm1115_vm9, %v1120_v33, 0.0  ;;  %v4853_v23 = vld [vmem:[%s7373_s6 + $0x58] sm:$0xff]  ;;  %v606_v33 = vld [vmem:[%s7375_s8 + $0x8] sm:$0xff] }
 0x2b6   : > { %5398 = vmatprep.mubr.msk.f32.mxu0 %vm733_vm1, %v1112_v24  ;;  %v5926_v24 = vpack.c.bf16 %v4853_v23, %v4852_v22  ;;  %v2016_v22 = vld [vmem:[%s7377_s10 + $0x50] sm:$0xff]  ;;  %v2017_v23 = vld [vmem:[%s7377_s10 + $0x58] sm:$0xff] }
 0x2b8   : > { %5881 = vmatpush3.bf16.msra.mxu0 %v5878_v18  ;;  %v4845_v18 = vld [vmem:[%s7371_s4 + $0x118] sm:$0xff] }
 0x2b9   : > { %5883 = vmatprep.subr.bf16.mxu0 %v5882_v25 }
 0x2bb   : > { %5399 = vmatmul.mubr.msk.f32.vlgmr.msra.gmra.mrb[4].mxu0 %vm733_vm1, %v1106_v31 }
 0x2bc   : > { %5885 = vmatpush3.bf16.msra.mxu0 %v5882_v25  ;;  %5409 = vmatprep.mubr.msk.f32.mxu0 %vm733_vm1, %v1119_v32  ;;  %v4849_v25 = vld [vmem:[%s7372_s5 + $0x2] ss:$0 sm:$0xff] }
 0x2bd   : > { %5887 = vmatprep.subr.bf16.mxu0 %v5886_v30  ;;  %v605_v32 = vld [vmem:[%s7375_s8] sm:$0xff] }
 0x2c0   : > { %5889 = vmatpush3.bf16.msra.mxu0 %v5886_v30 }
 0x2c1   : > { %5923 = vmatprep.subr.bf16.mxu0 %v5922_v57 }
 0x2c3   : > { %5410 = vmatmul.mubr.msk.f32.vlgmr.msra.gmra.mrb[4].mxu0 %vm733_vm1, %v1126_v34  ;;  %v5930_v34 = vpack.c.bf16 %v606_v33, %v605_v32  ;;  %v4863_v32 = vld [vmem:[%s7379_s12 + $0x28] sm:$0xff] }
 0x2c4   : > { %5925 = vmatpush3.bf16.msra.mxu0 %v5922_v57  ;;  %v2006_v57 = vld [vmem:[%s7377_s10] sm:$0xff] }
 0x2c5   : > { %5927 = vmatprep.subr.bf16.mxu0 %v5926_v24 }
 0x2c8   : > { %5929 = vmatpush3.bf16.msra.mxu0 %v5926_v24  ;;  %v2018_v24 = vld [vmem:[%s7377_s10 + $0x60] sm:$0xff] }
 0x2c9   : > { %5931 = vmatprep.subr.bf16.mxu0 %v5930_v34 }
 0x396   : > { %v5411_v40 = vpop.f32.mrb[4].mxu0 }
 0x397   : > { %v1396_v41 = vadd.f32 %v5411_v40, %v4821_v38  ;;  %v1376_v42 = vpop.f32.mrb[5].mxu0 }
 0x398   : > { %v1395_v43 = vadd.f32 %v4821_v38, %v1376_v42  ;;  %v4855_v38 = vld [vmem:[%s7374_s7 + $0x2] ss:$0 sm:$0xff] }
 0x399   : > { %v1398_v45 = vmax.f32 %v1396_v41, 0.0 }
 0x39a   : > { %v1397_v44 = vmax.f32 %v1395_v43, 0.0 }
 0x39c   : > { %5420 = vmatprep.mubr.msk.f32.mxu1 %vm733_vm1, %v1397_v44 }
 0x39d   : > { %5421 = vmatmul.mubr.msk.f32.vlgmr.msra.gmra.mrb[2].mxu1 %vm733_vm1, %v1398_v45 }
 0x39e   : > { %5901 = vmatpush3.bf16.msra.mxu1 %v5898_v48  ;;  %v4858_v48 = vld [vmem:[%s7376_s9] ss:$0 sm:$0xff] }
 0x39f   : > { %5903 = vmatprep.subr.bf16.mxu1 %v5902_v51 }
 0x3a2   : > { %5905 = vmatpush3.bf16.msra.mxu1 %v5902_v51 }
 0x3a3   : > { %5907 = vmatprep.subr.bf16.mxu1 %v5906_v54 }
 0x470   : > { %v5422_v59 = vpop.f32.mrb[2].mxu1 }
 0x471   : > { %v1490_v60 = vadd.f32 %v5422_v59, %v4827_v58  ;;  %v1484_v61 = vpop.f32.mrb[3].mxu1  ;;  %v2008_v59 = vld [vmem:[%s7377_s10 + $0x10] sm:$0xff] }
 0x472   : > { %v1485_v62 = vadd.f32 %v4827_v58, %v1484_v61  ;;  %v2007_v58 = vld [vmem:[%s7377_s10 + $0x8] sm:$0xff]  ;;  %v2009_v61 = vld [vmem:[%s7377_s10 + $0x18] sm:$0xff] }
 0x473   : > { %v1494_v63 = vadd.f32 %v1490_v60, %v6535_v14  ;;  %v5914_v14 = vpack.c.bf16 %v4843_v10, %v4842_v9  ;;  %v5938_v60 = vpack.c.bf16 %v2007_v58, %v2006_v57 }
 0x474   : > { %v1493_v0 = vadd.f32 %v1485_v62, %v6538_v16  ;;  %v4844_v16 = vld [vmem:[%s7371_s4 + $0x110] sm:$0xff]  ;;  %v5942_v62 = vpack.c.bf16 %v2009_v61, %v2008_v59  ;;  %v4870_v59 = vld [vmem:[%s7379_s12 + $0x40] sm:$0xff] }
 0x475   : > { %v1496_v4 = vmul.f32 %v1494_v63, %v6526_v11  ;;  %v5918_v19 = vpack.c.bf16 %v4845_v18, %v4844_v16  ;;  %v2010_v63 = vld [vmem:[%s7377_s10 + $0x20] sm:$0xff] }
 0x476   : > { %v1495_v5 = vmul.f32 %v1493_v0, %v6519_v3  ;;  %v2011_v0 = vld [vmem:[%s7377_s10 + $0x28] sm:$0xff] }
 0x477   : > { %v1500_v7 = vrot.slane %v1496_v4, 4  ;;  %v5946_v1 = vpack.c.bf16 %v2011_v0, %v2010_v63  ;;  %v4872_v0 = vld [vmem:[%s7379_s12 + $0x50] sm:$0xff] }
 0x478   : > { %5431 = vmatprep.mubr.msk.f32.mxu1 %vm733_vm1, %v1495_v5  ;;  %v1499_v8 = vrot.slane %v1495_v5, 4 }
 0x479   : > { %5432 = vmatmul.mubr.msk.f32.vlgmr.msra.gmra.mrb[4].mxu1 %vm733_vm1, %v1496_v4 }
 0x47a   : > { %5909 = vmatpush3.bf16.msra.mxu1 %v5906_v54  ;;  %v1503_v12 = vsel %vm1501_vm10, %v1500_v7, %v1499_v8  ;;  %v1502_v20 = vsel %vm1501_vm10, %v1499_v8, %v1500_v7 }
 0x47b   : > { %5911 = vmatprep.subr.bf16.mxu1 %v5910_v6  ;;  %v1508_v13 = vsel %vm1497_vm11, %v1503_v12, 0.0  ;;  %v1517_v21 = vsel %vm1511_vm12, %v1503_v12, 0.0 }
 0x47c   : > { %5442 = vmatprep.mubr.msk.f32.mxu1 %vm733_vm1, %v1508_v13 }
 0x47e   : > { %5913 = vmatpush3.bf16.msra.mxu1 %v5910_v6 }
 0x47f   : > { %5915 = vmatprep.subr.bf16.mxu1 %v5914_v14 }
 0x481   : > { %5443 = vmatmul.mubr.msk.f32.vlgmr.msra.gmra.mrb[4].mxu1 %vm733_vm1, %v1502_v20 }
 0x482   : > { %5917 = vmatpush3.bf16.msra.mxu1 %v5914_v14  ;;  %5453 = vmatprep.mubr.msk.f32.mxu1 %vm733_vm1, %v1502_v20  ;;  %v2015_v20 = vld [vmem:[%s7377_s10 + $0x48] sm:$0xff] }
 0x483   : > { %5919 = vmatprep.subr.bf16.mxu1 %v5918_v19 }
 0x486   : > { %5921 = vmatpush3.bf16.msra.mxu1 %v5918_v19  ;;  %v2014_v19 = vld [vmem:[%s7377_s10 + $0x40] sm:$0xff] }
 0x489   : > { %5454 = vmatmul.mubr.msk.f32.vlgmr.msra.gmra.mrb[4].mxu1 %vm733_vm1, %v1517_v21  ;;  %v5954_v21 = vpack.c.bf16 %v2015_v20, %v2014_v19  ;;  %v4876_v19 = vld [vmem:[%s7380_s13] ss:$0 sm:$0xff] }
 0x55c   : > { %v5455_v26 = vpop.f32.mrb[4].mxu1 }
 0x55d   : > { %v1787_v27 = vadd.f32 %v5455_v26, %v4849_v25  ;;  %v1767_v28 = vpop.f32.mrb[5].mxu1  ;;  %v2019_v26 = vld [vmem:[%s7377_s10 + $0x68] sm:$0xff] }
 0x55e   : > { %v1786_v29 = vadd.f32 %v4849_v25, %v1767_v28  ;;  %v5958_v25 = vpack.c.bf16 %v2017_v23, %v2016_v22  ;;  %v2020_v28 = vld [vmem:[%s7377_s10 + $0x70] sm:$0xff] }
 0x55f   : > { %v1789_v31 = vmax.f32 %v1787_v27, 0.0  ;;  %v5962_v27 = vpack.c.bf16 %v2019_v26, %v2018_v24  ;;  %v4884_v26 = vld [vmem:[%s7379_s12 + $0x80] sm:$0xff] }
 0x560   : > { %v1788_v30 = vmax.f32 %v1786_v29, 0.0  ;;  %v2021_v29 = vld [vmem:[%s7377_s10 + $0x78] sm:$0xff] }
 0x562   : > { %5464 = vmatprep.mubr.msk.f32.mxu0 %vm733_vm1, %v1788_v30  ;;  %v5966_v30 = vpack.c.bf16 %v2021_v29, %v2020_v28  ;;  %v4886_v29 = vld [vmem:[%s7379_s12 + $0x90] sm:$0xff] }
 0x563   : > { %5465 = vmatmul.mubr.msk.f32.vlgmr.msra.gmra.mrb[6].mxu0 %vm733_vm1, %v1789_v31  ;;  %v4862_v31 = vld [vmem:[%s7379_s12 + $0x20] sm:$0xff] }
 0x564   : > { %5933 = vmatpush3.bf16.msra.mxu0 %v5930_v34  ;;  %v5970_v33 = vpack.c.bf16 %v4863_v32, %v4862_v31  ;;  %v4880_v32 = vld [vmem:[%s7379_s12 + $0x60] sm:$0xff] }
 0x565   : > { %5935 = vmatprep.subr.bf16.mxu0 %v5934_v37 }
 0x566   : > { %5971 = vmatprep.subr.bf16.mxu1 %v5970_v33 }
 0x567   : > { %5973 = vmatpush3.bf16.msra.mxu1 %v5970_v33  ;;  %v4881_v33 = vld [vmem:[%s7379_s12 + $0x68] sm:$0xff] }
 0x568   : > { %5937 = vmatpush3.bf16.msra.mxu0 %v5934_v37 }
 0x569   : > { %5939 = vmatprep.subr.bf16.mxu0 %v5938_v60 }
 0x636   : > { %v5466_v40 = vpop.f32.mrb[6].mxu0 }
 0x637   : > { %v1881_v41 = vadd.f32 %v5466_v40, %v4855_v38  ;;  %v1875_v42 = vpop.f32.mrb[7].mxu0 }
 0x638   : > { %v1876_v43 = vadd.f32 %v4855_v38, %v1875_v42 }
 0x639   : > { %v1885_v44 = vadd.f32 %v1881_v41, %v1496_v4  ;;  %v2013_v4 = vld [vmem:[%s7377_s10 + $0x38] sm:$0xff] }
 0x63a   : > { %v1884_v45 = vadd.f32 %v1876_v43, %v1495_v5  ;;  %v5950_v5 = vpack.c.bf16 %v2013_v4, %v2012_v2  ;;  %v4864_v43 = vld [vmem:[%s7379_s12 + $0x30] sm:$0xff] }
 0x63b   : > { %v1887_v47 = vmul.f32 %v1885_v44, %v6526_v11  ;;  %v4865_v44 = vld [vmem:[%s7379_s12 + $0x38] sm:$0xff] }
 0x63c   : > { %v1886_v46 = vmul.f32 %v1884_v45, %v6519_v3  ;;  %v5974_v45 = vpack.c.bf16 %v4865_v44, %v4864_v43 }
 0x63e   : > { %5475 = vmatprep.mubr.msk.f32.mxu0 %vm733_vm1, %v1886_v46  ;;  %5975 = vmatprep.subr.bf16.mxu1 %v5974_v45  ;;  %v2121_v46 = vld [vmem:[%s7379_s12] sm:$0xff] }
 0x63f   : > { %5476 = vmatmul.mubr.msk.f32.vlgmr.msra.gmra.mrb[8].mxu0 %vm733_vm1, %v1887_v47  ;;  %5977 = vmatpush3.bf16.msra.mxu1 %v5974_v45  ;;  %v2122_v47 = vld [vmem:[%s7379_s12 + $0x8] sm:$0xff] }
 0x640   : > { %5941 = vmatpush3.bf16.msra.mxu0 %v5938_v60  ;;  %v4871_v60 = vld [vmem:[%s7379_s12 + $0x48] sm:$0xff] }
 0x641   : > { %5943 = vmatprep.subr.bf16.mxu0 %v5942_v62  ;;  %v5986_v63 = vpack.c.bf16 %v4871_v60, %v4870_v59  ;;  %v4895_v59 = vld [vmem:[%s7379_s12 + $0xb8] sm:$0xff] }
 0x644   : > { %5945 = vmatpush3.bf16.msra.mxu0 %v5942_v62 }
 0x645   : > { %5947 = vmatprep.subr.bf16.mxu0 %v5946_v1 }
 0x648   : > { %5949 = vmatpush3.bf16.msra.mxu0 %v5946_v1  ;;  %v4873_v1 = vld [vmem:[%s7379_s12 + $0x58] sm:$0xff] }
 0x649   : > { %5951 = vmatprep.subr.bf16.mxu0 %v5950_v5 }
 0x64c   : > { %5953 = vmatpush3.bf16.msra.mxu0 %v5950_v5  ;;  %v5990_v5 = vpack.c.bf16 %v4873_v1, %v4872_v0 }
 0x64d   : > { %5955 = vmatprep.subr.bf16.mxu0 %v5954_v21 }
 0x650   : > { %5957 = vmatpush3.bf16.msra.mxu0 %v5954_v21 }
 0x651   : > { %5959 = vmatprep.subr.bf16.mxu0 %v5958_v25 }
 0x654   : > { %5961 = vmatpush3.bf16.msra.mxu0 %v5958_v25 }
 0x655   : > { %5963 = vmatprep.subr.bf16.mxu0 %v5962_v27 }
 0x658   : > { %5965 = vmatpush3.bf16.msra.mxu0 %v5962_v27  ;;  %v4885_v27 = vld [vmem:[%s7379_s12 + $0x88] sm:$0xff] }
 0x659   : > { %5967 = vmatprep.subr.bf16.mxu0 %v5966_v30  ;;  %v6002_v28 = vpack.c.bf16 %v4885_v27, %v4884_v26  ;;  %v4928_v26 = vld [vmem:[%s7381_s14 + $0x40] sm:$0xff]  ;;  %v4929_v27 = vld [vmem:[%s7381_s14 + $0x48] sm:$0xff] }
 0x65c   : > { %5969 = vmatpush3.bf16.msra.mxu0 %v5966_v30  ;;  %v4887_v30 = vld [vmem:[%s7379_s12 + $0x98] sm:$0xff] }
 0x65d   : > { %6003 = vmatprep.subr.bf16.mxu0 %v6002_v28  ;;  %v6006_v31 = vpack.c.bf16 %v4887_v30, %v4886_v29  ;;  %v4905_v29 = vld [vmem:[%s7382_s15 + $0x1] ss:$0 sm:$0xff] }
 0x712   : > { %v5477_v50 = vpop.f32.mrb[8].mxu0 }
 0x713   : > { %v1972_v51 = vadd.f32 %v5477_v50, %v4858_v48  ;;  %v1966_v52 = vpop.f32.mrb[9].mxu0  ;;  %v4861_v50 = vld [vmem:[%s7378_s11] ss:$0 sm:$0xff] }
 0x714   : > { %v1967_v53 = vadd.f32 %v4858_v48, %v1966_v52  ;;  %v5978_v48 = vpack.c.bf16 %v2122_v47, %v2121_v46  ;;  %v2123_v52 = vld [vmem:[%s7379_s12 + $0x10] sm:$0xff]  ;;  %v4883_v47 = vld [vmem:[%s7379_s12 + $0x78] sm:$0xff] }
 0x715   : > { %v1976_v54 = vmul.f32 %v1972_v51, %v6526_v11  ;;  %v4882_v46 = vld [vmem:[%s7379_s12 + $0x70] sm:$0xff] }
 0x716   : > { %v1975_v55 = vmul.f32 %v1967_v53, %v6519_v3  ;;  %5979 = vmatprep.subr.bf16.mxu1 %v5978_v48  ;;  %v2124_v53 = vld [vmem:[%s7379_s12 + $0x18] sm:$0xff] }
 0x717   : > { %1978 = vst [vmem:[%s6697_s2 + $0x8] sm:$0xff] %v1976_v54  ;;  %v1983_v56 = vsel %vm1981_vm13, %v1976_v54, -inf  ;;  %v5982_v57 = vpack.c.bf16 %v2124_v53, %v2123_v52 }
 0x718   : > { %v1982_v15 = vsel %vm1981_vm13, %v1975_v55, -inf  ;;  %1977 = vst [vmem:[%s6697_s2] sm:$0xff] %v1975_v55 }
 0x719   : > { %1984 = vmax.xlane.f32.xlu1 %v1982_v15 }
 0x71d   : > { %1986 = vmax.xlane.f32.xlu1 %v1983_v56 }
 0x7a6   : > { %v1985_v6 = vpop.xlane.xlu1 %1984 }
 0x7a7   : > { %v1988_v7 = vsub.f32 %v1982_v15, %v1985_v6 }
 0x7a9   : > { %v1990_v8 = vmul.f32 1.442695, %v1988_v7  ;;  %v2391_v7 = vld [vmem:[%s7381_s14] sm:$0xff] }
 0x7aa   : > { %v1987_v9 = vpop.xlane.xlu1 %1986 }
 0x7ab   : > { %6257 = vpow2.f32 %v1990_v8  ;;  %v1989_v10 = vsub.f32 %v1983_v56, %v1987_v9  ;;  %v2392_v8 = vld [vmem:[%s7381_s14 + $0x8] sm:$0xff] }
 0x7ad   : > { %v1992_v12 = vmul.f32 1.442695, %v1989_v10  ;;  %v5994_v10 = vpack.c.bf16 %v2392_v8, %v2391_v7  ;;  %v4899_v7 = vld [vmem:[%s7380_s13 + $0x1] ss:$0 sm:$0xff] }
 0x7af   : > { %6259 = vpow2.f32 %v1992_v12 }
 0x7b5   : > { %v6258_v13 = vpop.eup %6257 }
 0x7b6   : > { %v1994_v14 = vsel %vm1981_vm13, %v6258_v13, 0.0 }
 0x7b7   : > { %1996 = vadd.xlane.f32.xlu0 %v1994_v14 }
 0x7b9   : > { %v6260_v16 = vpop.eup %6259 }
 0x7ba   : > { %v1995_v18 = vsel %vm1981_vm13, %v6260_v16, 0.0  ;;  %v2394_v16 = vld [vmem:[%s7381_s14 + $0x18] sm:$0xff] }
 0x7bb   : > { %1998 = vadd.xlane.f32.xlu1 %v1995_v18 }
 0x844   : > { %v1997_v34 = vpop.xlane.xlu0 %1996 }
 0x845   : > { %6261 = vrcp.f32 %v1997_v34  ;;  %v6010_v34 = vpack.c.bf16 %v4881_v33, %v4880_v32 }
 0x848   : > { %v1999_v35 = vpop.xlane.xlu1 %1998 }
 0x849   : > { %6263 = vrcp.f32 %v1999_v35  ;;  %v4900_v35 = vld [vmem:[%s7381_s14 + $0x20] sm:$0xff] }
 0x84f   : > { %v6262_v36 = vpop.eup %6261 }
 0x850   : > { %v2002_v37 = vmul.f32 %v6262_v36, %v1994_v14  ;;  %v2393_v14 = vld [vmem:[%s7381_s14 + $0x10] sm:$0xff]  ;;  %v4901_v36 = vld [vmem:[%s7381_s14 + $0x28] sm:$0xff] }
 0x852   : > { %v2004_v38 = vmul.f32 %v2002_v37, %v6519_v3  ;;  %v6026_v37 = vpack.c.bf16 %v4901_v36, %v4900_v35  ;;  %v4910_v36 = vld [vmem:[%s7379_s12 + $0xd0] sm:$0xff] }
 0x853   : > { %v6264_v40 = vpop.eup %6263 }
 0x854   : > { %5510 = vmatprep.mubr.f32.mxu0 %v2004_v38  ;;  %v2003_v41 = vmul.f32 %v6264_v40, %v1995_v18  ;;  %v5998_v18 = vpack.c.bf16 %v2394_v16, %v2393_v14  ;;  %v4877_v38 = vld [vmem:[%s7382_s15] ss:$0 sm:$0xff] }
 0x855   : > { %v4912_v16 = vld [vmem:[%s7379_s12 + $0xe0] sm:$0xff] }
 0x856   : > { %v2005_v42 = vmul.f32 %v2003_v41, %v6526_v11 }
 0x858   : > { %5511 = vmatmul.mubr.f32.vlgmr.msra.gmra.mrb[10].mxu0 %v2005_v42 }
 0x859   : > { %6005 = vmatpush3.bf16.msra.mxu0 %v6002_v28  ;;  %v6058_v28 = vpack.c.bf16 %v4929_v27, %v4928_v26 }
 0x85a   : > { %6007 = vmatprep.subr.bf16.mxu0 %v6006_v31 }
 0x85d   : > { %6009 = vmatpush3.bf16.msra.mxu0 %v6006_v31 }
 0x85e   : > { %6011 = vmatprep.subr.bf16.mxu0 %v6010_v34 }
 0x92b   : > { %v5512_v51 = vpop.f32.mrb[10].mxu0 }
 0x92c   : > { %v6789_v54 = vadd.f32 %v5512_v51, %v4861_v50  ;;  %v2100_v55 = vpop.f32.mrb[11].mxu0  ;;  %v6014_v51 = vpack.c.bf16 %v4883_v47, %v4882_v46 }
 0x92d   : > { %v6791_v15 = vadd.f32 %v4861_v50, %v2100_v55  ;;  %v4893_v55 = vld [vmem:[%s7379_s12 + $0xa8] sm:$0xff] }
 0x92e   : > { %v2110_v56 = vrot.slane %v6789_v54, 7  ;;  %v2116_v4 = vrot.slane %v6789_v54, 1 }
 0x92f   : > { %v2109_v58 = vrot.slane %v6791_v15, 7  ;;  %5521 = vmatprep.mubr.msk.f32.mxu1 %vm733_vm1, %v6791_v15  ;;  %v2115_v2 = vrot.slane %v6791_v15, 1 }
 0x930   : > { %5522 = vmatmul.mubr.msk.f32.vlgmr.msra.gmra.mrb[6].mxu1 %vm733_vm1, %v6789_v54 }
 0x931   : > { %5981 = vmatpush3.bf16.msra.mxu1 %v5978_v48  ;;  %v2112_v61 = vsel %vm702_vm2, %v2110_v56, %v2109_v58  ;;  %v2111_v6 = vsel %vm702_vm2, %v2109_v58, %v2110_v56  ;;  %v2117_v9 = vsel %vm715_vm4, %v2115_v2, %v2116_v4  ;;  %v2118_v12 = vsel %vm715_vm4, %v2116_v4, %v2115_v2  ;;  %v4894_v58 = vld [vmem:[%s7379_s12 + $0xb0] sm:$0xff] }
 0x932   : > { %5983 = vmatprep.subr.bf16.mxu1 %v5982_v57  ;;  %v2113_v62 = vsel %vm698_vm3, %v2112_v61, 0.0  ;;  %v2120_v13 = vsel %vm712_vm5, %v2118_v12, 0.0  ;;  %v4902_v4 = vld [vmem:[%s7381_s14 + $0x30] sm:$0xff] }
 0x933   : > { %5532 = vmatprep.mubr.msk.f32.mxu1 %vm733_vm1, %v2113_v62  ;;  %v6022_v62 = vpack.c.bf16 %v4895_v59, %v4894_v58 }
 0x935   : > { %5985 = vmatpush3.bf16.msra.mxu1 %v5982_v57 }
 0x936   : > { %5987 = vmatprep.subr.bf16.mxu1 %v5986_v63 }
 0x938   : > { %5533 = vmatmul.mubr.msk.f32.vlgmr.msra.gmra.mrb[6].mxu1 %vm733_vm1, %v2111_v6 }
 0x939   : > { %5989 = vmatpush3.bf16.msra.mxu1 %v5986_v63  ;;  %5543 = vmatprep.mubr.msk.f32.mxu1 %vm733_vm1, %v2117_v9 }
 0x93a   : > { %5991 = vmatprep.subr.bf16.mxu1 %v5990_v5 }
 0x93d   : > { %5993 = vmatpush3.bf16.msra.mxu1 %v5990_v5  ;;  %v4903_v5 = vld [vmem:[%s7381_s14 + $0x38] sm:$0xff] }
 0x93e   : > { %5995 = vmatprep.subr.bf16.mxu1 %v5994_v10  ;;  %v6030_v6 = vpack.c.bf16 %v4903_v5, %v4902_v4  ;;  %v2025_v4 = vld [vmem:[%s7383_s16 + $0x10] sm:$0xff]  ;;  %v2026_v5 = vld [vmem:[%s7383_s16 + $0x18] sm:$0xff] }
 0x940   : > { %5544 = vmatmul.mubr.msk.f32.vlgmr.msra.gmra.mrb[6].mxu1 %vm733_vm1, %v2120_v13 }
 0x941   : > { %5997 = vmatpush3.bf16.msra.mxu1 %v5994_v10 }
 0x942   : > { %5999 = vmatprep.subr.bf16.mxu1 %v5998_v18 }
 0x945   : > { %6001 = vmatpush3.bf16.msra.mxu1 %v5998_v18  ;;  %v4913_v18 = vld [vmem:[%s7379_s12 + $0xe8] sm:$0xff] }
 0x946   : > { %6027 = vmatprep.subr.bf16.mxu1 %v6026_v37 }
 0xa13   : > { %v5545_v20 = vpop.f32.mrb[6].mxu1 }
 0xa14   : > { %v2388_v21 = vadd.f32 %v5545_v20, %v4876_v19  ;;  %v2369_v22 = vpop.f32.mrb[7].mxu1  ;;  %v4914_v20 = vld [vmem:[%s7379_s12 + $0xf0] sm:$0xff] }
 0xa15   : > { %v2387_v23 = vadd.f32 %v4876_v19, %v2369_v22  ;;  %v6034_v19 = vpack.c.bf16 %v4913_v18, %v4912_v16 }
 0xa16   : > { %v2390_v25 = vmax.f32 %v2388_v21, 0.0  ;;  %v4915_v21 = vld [vmem:[%s7379_s12 + $0xf8] sm:$0xff] }
 0xa17   : > { %v2389_v24 = vmax.f32 %v2387_v23, 0.0  ;;  %v6038_v22 = vpack.c.bf16 %v4915_v21, %v4914_v20  ;;  %v4908_v23 = vld [vmem:[%s7379_s12 + $0xc0] sm:$0xff] }
 0xa19   : > { %5554 = vmatprep.mubr.msk.f32.mxu1 %vm733_vm1, %v2389_v24  ;;  %v4909_v24 = vld [vmem:[%s7379_s12 + $0xc8] sm:$0xff] }
 0xa1a   : > { %5555 = vmatmul.mubr.msk.f32.vlgmr.msra.gmra.mrb[8].mxu1 %vm733_vm1, %v2390_v25  ;;  %v6042_v25 = vpack.c.bf16 %v4909_v24, %v4908_v23 }
 0xa1b   : > { %6029 = vmatpush3.bf16.msra.mxu1 %v6026_v37  ;;  %v4911_v37 = vld [vmem:[%s7379_s12 + $0xd8] sm:$0xff] }
 0xa1c   : > { %6031 = vmatprep.subr.bf16.mxu1 %v6030_v6 }
 0xa1f   : > { %6033 = vmatpush3.bf16.msra.mxu1 %v6030_v6  ;;  %v6070_v6 = vpack.c.bf16 %v2026_v5, %v2025_v4 }
 0xa20   : > { %6035 = vmatprep.subr.bf16.mxu1 %v6034_v19 }
 0xaed   : > { %v5556_v40 = vpop.f32.mrb[8].mxu1 }
 0xaee   : > { %v2480_v41 = vadd.f32 %v5556_v40, %v4877_v38  ;;  %v2474_v42 = vpop.f32.mrb[9].mxu1 }
 0xaef   : > { %v2475_v43 = vadd.f32 %v4877_v38, %v2474_v42 }
 0xaf0   : > { %v2484_v44 = vadd.f32 %v2480_v41, %v6789_v54  ;;  %v4892_v54 = vld [vmem:[%s7379_s12 + $0xa0] sm:$0xff]  ;;  %v6046_v41 = vpack.c.bf16 %v4911_v37, %v4910_v36  ;;  %v4947_v37 = vld [vmem:[%s7377_s10 + $0xb0] sm:$0xff] }
 0xaf1   : > { %v2483_v45 = vadd.f32 %v2475_v43, %v6791_v15  ;;  %v6018_v57 = vpack.c.bf16 %v4893_v55, %v4892_v54  ;;  %v4930_v55 = vld [vmem:[%s7381_s14 + $0x50] sm:$0xff] }
 0xaf2   : > { %v6882_v48 = vmul.f32 %v2484_v44, %v6526_v11  ;;  %v4920_v44 = vld [vmem:[%s7379_s12 + $0x100] sm:$0xff] }
 0xaf3   : > { %v6885_v50 = vmul.f32 %v2483_v45, %v6519_v3  ;;  %v4921_v45 = vld [vmem:[%s7379_s12 + $0x108] sm:$0xff] }
 0xaf4   : > { %v2488_v52 = vrot.slane %v6882_v48, 6  ;;  %v2494_v61 = vrot.slane %v6882_v48, 2 }
 0xaf5   : > { %5565 = vmatprep.mubr.msk.f32.mxu0 %vm733_vm1, %v6885_v50  ;;  %v2487_v53 = vrot.slane %v6885_v50, 6  ;;  %v2493_v60 = vrot.slane %v6885_v50, 2 }
 0xaf6   : > { %5566 = vmatmul.mubr.msk.f32.vlgmr.msra.gmra.mrb[12].mxu0 %vm733_vm1, %v6882_v48 }
 0xaf7   : > { %6013 = vmatpush3.bf16.msra.mxu0 %v6010_v34  ;;  %v2490_v15 = vsel %vm1105_vm6, %v2488_v52, %v2487_v53  ;;  %v2489_v63 = vsel %vm1105_vm6, %v2487_v53, %v2488_v52  ;;  %v2495_v0 = vsel %vm1118_vm8, %v2493_v60, %v2494_v61  ;;  %v2496_v1 = vsel %vm1118_vm8, %v2494_v61, %v2493_v60 }
 0xaf8   : > { %6015 = vmatprep.subr.bf16.mxu0 %v6014_v51  ;;  %v2491_v56 = vsel %vm1101_vm7, %v2490_v15, 0.0  ;;  %v2498_v2 = vsel %vm1115_vm9, %v2496_v1, 0.0  ;;  %v4931_v15 = vld [vmem:[%s7381_s14 + $0x58] sm:$0xff]  ;;  %v2024_v1 = vld [vmem:[%s7383_s16 + $0x8] sm:$0xff] }
 0xaf9   : > { %5576 = vmatprep.mubr.msk.f32.mxu0 %vm733_vm1, %v2491_v56  ;;  %v6062_v56 = vpack.c.bf16 %v4931_v15, %v4930_v55  ;;  %v4951_v55 = vld [vmem:[%s7377_s10 + $0xd0] sm:$0xff]  ;;  %v4953_v15 = vld [vmem:[%s7377_s10 + $0xe0] sm:$0xff] }
 0xafb   : > { %6017 = vmatpush3.bf16.msra.mxu0 %v6014_v51  ;;  %v4923_v51 = vld [vmem:[%s7379_s12 + $0x118] sm:$0xff] }
 0xafc   : > { %6019 = vmatprep.subr.bf16.mxu0 %v6018_v57 }
 0xafe   : > { %5577 = vmatmul.mubr.msk.f32.vlgmr.msra.gmra.mrb[12].mxu0 %vm733_vm1, %v2489_v63 }
 0xaff   : > { %6021 = vmatpush3.bf16.msra.mxu0 %v6018_v57  ;;  %5587 = vmatprep.mubr.msk.f32.mxu0 %vm733_vm1, %v2495_v0  ;;  %v4927_v57 = vld [vmem:[%s7380_s13 + $0x2] ss:$0 sm:$0xff] }
 0xb00   : > { %6023 = vmatprep.subr.bf16.mxu0 %v6022_v62  ;;  %v2023_v0 = vld [vmem:[%s7383_s16] sm:$0xff] }
 0xb03   : > { %6025 = vmatpush3.bf16.msra.mxu0 %v6022_v62 }
 0xb04   : > { %6059 = vmatprep.subr.bf16.mxu0 %v6058_v28 }
 0xb06   : > { %5588 = vmatmul.mubr.msk.f32.vlgmr.msra.gmra.mrb[12].mxu0 %vm733_vm1, %v2498_v2  ;;  %v6066_v2 = vpack.c.bf16 %v2024_v1, %v2023_v0 }
 0xb07   : > { %6061 = vmatpush3.bf16.msra.mxu0 %v6058_v28  ;;  %v4941_v28 = vld [vmem:[%s7377_s10 + $0x80] sm:$0xff] }
 0xb08   : > { %6063 = vmatprep.subr.bf16.mxu0 %v6062_v56 }
 0xb0b   : > { %6065 = vmatpush3.bf16.msra.mxu0 %v6062_v56  ;;  %v6094_v56 = vpack.c.bf16 %v4952_v49, %v4951_v55 }
 0xb0c   : > { %6067 = vmatprep.subr.bf16.mxu0 %v6066_v2 }
 0xbd9   : > { %v5589_v8 = vpop.f32.mrb[12].mxu0 }
 0xbda   : > { %v2768_v9 = vadd.f32 %v5589_v8, %v4899_v7  ;;  %v2748_v10 = vpop.f32.mrb[13].mxu0 }
 0xbdb   : > { %v2767_v12 = vadd.f32 %v4899_v7, %v2748_v10  ;;  %v4933_v7 = vld [vmem:[%s7382_s15 + $0x2] ss:$0 sm:$0xff] }
 0xbdc   : > { %v2770_v14 = vmax.f32 %v2768_v9, 0.0 }
 0xbdd   : > { %v2769_v13 = vmax.f32 %v2767_v12, 0.0 }
 0xbdf   : > { %5598 = vmatprep.mubr.msk.f32.mxu1 %vm733_vm1, %v2769_v13 }
 0xbe0   : > { %5599 = vmatmul.mubr.msk.f32.vlgmr.msra.gmra.mrb[10].mxu1 %vm733_vm1, %v2770_v14 }
 0xbe1   : > { %6037 = vmatpush3.bf16.msra.mxu1 %v6034_v19  ;;  %v4936_v19 = vld [vmem:[%s7384_s17] ss:$0 sm:$0xff] }
 0xbe2   : > { %6039 = vmatprep.subr.bf16.mxu1 %v6038_v22 }
 0xbe5   : > { %6041 = vmatpush3.bf16.msra.mxu1 %v6038_v22 }
 0xbe6   : > { %6043 = vmatprep.subr.bf16.mxu1 %v6042_v25 }
 0xcb3   : > { %v5600_v30 = vpop.f32.mrb[10].mxu1 }
 0xcb4   : > { %v2862_v31 = vadd.f32 %v5600_v30, %v4905_v29  ;;  %v2856_v32 = vpop.f32.mrb[11].mxu1  ;;  %v4943_v30 = vld [vmem:[%s7377_s10 + $0x90] sm:$0xff] }
 0xcb5   : > { %v2857_v33 = vadd.f32 %v4905_v29, %v2856_v32  ;;  %v4942_v29 = vld [vmem:[%s7377_s10 + $0x88] sm:$0xff]  ;;  %v4944_v32 = vld [vmem:[%s7377_s10 + $0x98] sm:$0xff] }
 0xcb6   : > { %v2866_v34 = vadd.f32 %v2862_v31, %v6882_v48  ;;  %v6050_v48 = vpack.c.bf16 %v4921_v45, %v4920_v44  ;;  %v6074_v31 = vpack.c.bf16 %v4942_v29, %v4941_v28  ;;  %v4976_v29 = vld [vmem:[%s7379_s12 + $0x160] sm:$0xff] }
 0xcb7   : > { %v2865_v35 = vadd.f32 %v2857_v33, %v6885_v50  ;;  %v4922_v50 = vld [vmem:[%s7379_s12 + $0x110] sm:$0xff]  ;;  %v6078_v33 = vpack.c.bf16 %v4944_v32, %v4943_v30  ;;  %v4977_v30 = vld [vmem:[%s7379_s12 + $0x168] sm:$0xff] }
 0xcb8   : > { %v2868_v38 = vmul.f32 %v2866_v34, %v6526_v11  ;;  %v6054_v52 = vpack.c.bf16 %v4923_v51, %v4922_v50  ;;  %v4945_v34 = vld [vmem:[%s7377_s10 + $0xa0] sm:$0xff] }
 0xcb9   : > { %v2867_v40 = vmul.f32 %v2865_v35, %v6519_v3  ;;  %v4946_v35 = vld [vmem:[%s7377_s10 + $0xa8] sm:$0xff] }
 0xcba   : > { %v2870_v42 = vrot.slane %v2868_v38, 4  ;;  %v6082_v36 = vpack.c.bf16 %v4946_v35, %v4945_v34  ;;  %v4978_v34 = vld [vmem:[%s7379_s12 + $0x170] sm:$0xff]  ;;  %v4979_v35 = vld [vmem:[%s7379_s12 + $0x178] sm:$0xff] }
 0xcbb   : > { %5609 = vmatprep.mubr.msk.f32.mxu1 %vm733_vm1, %v2867_v40  ;;  %v2869_v43 = vrot.slane %v2867_v40, 4 }
 0xcbc   : > { %5610 = vmatmul.mubr.msk.f32.vlgmr.msra.gmra.mrb[12].mxu1 %vm733_vm1, %v2868_v38 }
 0xcbd   : > { %6045 = vmatpush3.bf16.msra.mxu1 %v6042_v25  ;;  %v2872_v46 = vsel %vm1501_vm10, %v2870_v42, %v2869_v43  ;;  %v2871_v53 = vsel %vm1501_vm10, %v2869_v43, %v2870_v42 }
 0xcbe   : > { %6047 = vmatprep.subr.bf16.mxu1 %v6046_v41  ;;  %v2873_v47 = vsel %vm1497_vm11, %v2872_v46, 0.0  ;;  %v2876_v54 = vsel %vm1511_vm12, %v2872_v46, 0.0 }
 0xcbf   : > { %5620 = vmatprep.mubr.msk.f32.mxu1 %vm733_vm1, %v2873_v47 }
 0xcc1   : > { %6049 = vmatpush3.bf16.msra.mxu1 %v6046_v41 }
 0xcc2   : > { %6051 = vmatprep.subr.bf16.mxu1 %v6050_v48 }
 0xcc4   : > { %5621 = vmatmul.mubr.msk.f32.vlgmr.msra.gmra.mrb[12].mxu1 %vm733_vm1, %v2871_v53 }
 0xcc5   : > { %6053 = vmatpush3.bf16.msra.mxu1 %v6050_v48  ;;  %5631 = vmatprep.mubr.msk.f32.mxu1 %vm733_vm1, %v2871_v53  ;;  %v4950_v53 = vld [vmem:[%s7377_s10 + $0xc8] sm:$0xff] }
 0xcc6   : > { %6055 = vmatprep.subr.bf16.mxu1 %v6054_v52 }
 0xcc9   : > { %6057 = vmatpush3.bf16.msra.mxu1 %v6054_v52  ;;  %v4949_v52 = vld [vmem:[%s7377_s10 + $0xc0] sm:$0xff] }
 0xcca   : > { %6075 = vmatprep.subr.bf16.mxu1 %v6074_v31 }
 0xccc   : > { %5632 = vmatmul.mubr.msk.f32.vlgmr.msra.gmra.mrb[12].mxu1 %vm733_vm1, %v2876_v54  ;;  %v6090_v54 = vpack.c.bf16 %v4950_v53, %v4949_v52 }
 0xccd   : > { %6077 = vmatpush3.bf16.msra.mxu1 %v6074_v31 }
 0xcce   : > { %6079 = vmatprep.subr.bf16.mxu1 %v6078_v33 }
 0xcd1   : > { %6081 = vmatpush3.bf16.msra.mxu1 %v6078_v33  ;;  %v6122_v33 = vpack.c.bf16 %v4977_v30, %v4976_v29 }
 0xcd2   : > { %6083 = vmatprep.subr.bf16.mxu1 %v6082_v36 }
 0xcd5   : > { %6085 = vmatpush3.bf16.msra.mxu1 %v6082_v36 }
 0xd9f   : > { %v5633_v58 = vpop.f32.mrb[12].mxu1 }
 0xda0   : > { %v3146_v59 = vadd.f32 %v5633_v58, %v4927_v57  ;;  %v3126_v60 = vpop.f32.mrb[13].mxu1 }
 0xda1   : > { %v3145_v61 = vadd.f32 %v4927_v57, %v3126_v60  ;;  %v4954_v57 = vld [vmem:[%s7377_s10 + $0xe8] sm:$0xff]  ;;  %v4956_v60 = vld [vmem:[%s7377_s10 + $0xf8] sm:$0xff] }
 0xda2   : > { %v3148_v63 = vmax.f32 %v3146_v59, 0.0  ;;  %v6098_v58 = vpack.c.bf16 %v4954_v57, %v4953_v15  ;;  %v4955_v59 = vld [vmem:[%s7377_s10 + $0xf0] sm:$0xff]  ;;  %v4997_v57 = vld [vmem:[%s7379_s12 + $0x1a8] sm:$0xff] }
 0xda3   : > { %v3147_v62 = vmax.f32 %v3145_v61, 0.0  ;;  %v6102_v61 = vpack.c.bf16 %v4956_v60, %v4955_v59  ;;  %v4998_v59 = vld [vmem:[%s7379_s12 + $0x1b0] sm:$0xff]  ;;  %v4999_v60 = vld [vmem:[%s7379_s12 + $0x1b8] sm:$0xff] }
 0xda5   : > { %5642 = vmatprep.mubr.msk.f32.mxu0 %vm733_vm1, %v3147_v62  ;;  %v4968_v62 = vld [vmem:[%s7379_s12 + $0x140] sm:$0xff] }
 0xda6   : > { %5643 = vmatmul.mubr.msk.f32.vlgmr.msra.gmra.mrb[14].mxu0 %vm733_vm1, %v3148_v63  ;;  %v4969_v63 = vld [vmem:[%s7379_s12 + $0x148] sm:$0xff] }
 0xda7   : > { %6069 = vmatpush3.bf16.msra.mxu0 %v6066_v2  ;;  %v6106_v0 = vpack.c.bf16 %v4969_v63, %v4968_v62  ;;  %v4992_v62 = vld [vmem:[%s7379_s12 + $0x180] sm:$0xff]  ;;  %v4993_v63 = vld [vmem:[%s7379_s12 + $0x188] sm:$0xff] }
 0xda8   : > { %6071 = vmatprep.subr.bf16.mxu0 %v6070_v6 }
 0xdab   : > { %6073 = vmatpush3.bf16.msra.mxu0 %v6070_v6 }
 0xdac   : > { %6107 = vmatprep.subr.bf16.mxu0 %v6106_v0 }
 0xe79   : > { %v5644_v8 = vpop.f32.mrb[14].mxu0 }
 0xe7a   : > { %v3240_v9 = vadd.f32 %v5644_v8, %v4933_v7  ;;  %v3234_v10 = vpop.f32.mrb[15].mxu0 }
 0xe7b   : > { %v3235_v12 = vadd.f32 %v4933_v7, %v3234_v10  ;;  %v4970_v10 = vld [vmem:[%s7379_s12 + $0x150] sm:$0xff] }
 0xe7c   : > { %v3244_v13 = vadd.f32 %v3240_v9, %v2868_v38  ;;  %v4948_v38 = vld [vmem:[%s7377_s10 + $0xb8] sm:$0xff] }
 0xe7d   : > { %v3243_v14 = vadd.f32 %v3235_v12, %v2867_v40  ;;  %v6086_v40 = vpack.c.bf16 %v4948_v38, %v4947_v37  ;;  %v4971_v12 = vld [vmem:[%s7379_s12 + $0x158] sm:$0xff]  ;;  %v6126_v38 = vpack.c.bf16 %v4979_v35, %v4978_v34 }
 0xe7e   : > { %v3246_v18 = vmul.f32 %v3244_v13, %v6526_v11  ;;  %v6110_v13 = vpack.c.bf16 %v4971_v12, %v4970_v10 }
 0xe7f   : > { %v3245_v16 = vmul.f32 %v3243_v14, %v6519_v3  ;;  %6087 = vmatprep.subr.bf16.mxu1 %v6086_v40  ;;  %v4964_v14 = vld [vmem:[%s7379_s12 + $0x120] sm:$0xff] }
 0xe80   : > { %6089 = vmatpush3.bf16.msra.mxu1 %v6086_v40 }
 0xe81   : > { %5653 = vmatprep.mubr.msk.f32.mxu0 %vm733_vm1, %v3245_v16  ;;  %6091 = vmatprep.subr.bf16.mxu1 %v6090_v54  ;;  %v4965_v16 = vld [vmem:[%s7379_s12 + $0x128] sm:$0xff] }
 0xe82   : > { %5654 = vmatmul.mubr.msk.f32.vlgmr.msra.gmra.mrb[16].mxu0 %vm733_vm1, %v3246_v18  ;;  %v6114_v18 = vpack.c.bf16 %v4965_v16, %v4964_v14  ;;  %v4995_v14 = vld [vmem:[%s7379_s12 + $0x198] sm:$0xff] }
 0xe83   : > { %6109 = vmatpush3.bf16.msra.mxu0 %v6106_v0  ;;  %v6146_v0 = vpack.c.bf16 %v4993_v63, %v4992_v62 }
 0xe84   : > { %6093 = vmatpush3.bf16.msra.mxu1 %v6090_v54  ;;  %6111 = vmatprep.subr.bf16.mxu0 %v6110_v13 }
 0xe85   : > { %6095 = vmatprep.subr.bf16.mxu1 %v6094_v56 }
 0xe87   : > { %6113 = vmatpush3.bf16.msra.mxu0 %v6110_v13  ;;  %v4994_v13 = vld [vmem:[%s7379_s12 + $0x190] sm:$0xff] }
 0xe88   : > { %6097 = vmatpush3.bf16.msra.mxu1 %v6094_v56  ;;  %6115 = vmatprep.subr.bf16.mxu0 %v6114_v18  ;;  %v4996_v56 = vld [vmem:[%s7379_s12 + $0x1a0] sm:$0xff] }
 0xe89   : > { %6099 = vmatprep.subr.bf16.mxu1 %v6098_v58 }
 0xe8c   : > { %6101 = vmatpush3.bf16.msra.mxu1 %v6098_v58  ;;  %v6138_v58 = vpack.c.bf16 %v4997_v57, %v4996_v56  ;;  %v5041_v56 = vld [vmem:[%s7381_s14 + $0xa8] sm:$0xff] }
 0xe8d   : > { %6103 = vmatprep.subr.bf16.mxu1 %v6102_v61 }
 0xe90   : > { %6105 = vmatpush3.bf16.msra.mxu1 %v6102_v61  ;;  %v6142_v61 = vpack.c.bf16 %v4999_v60, %v4998_v59 }
 0xe91   : > { %6139 = vmatprep.subr.bf16.mxu1 %v6138_v58 }
 0xf55   : > { %v5655_v20 = vpop.f32.mrb[16].mxu0 }
 0xf56   : > { %v3331_v21 = vadd.f32 %v5655_v20, %v4936_v19  ;;  %v3325_v22 = vpop.f32.mrb[17].mxu0 }
 0xf57   : > { %v3326_v23 = vadd.f32 %v4936_v19, %v3325_v22  ;;  %v4963_v19 = vld [vmem:[%s7378_s11 + $0x1] ss:$0 sm:$0xff]  ;;  %v4967_v22 = vld [vmem:[%s7379_s12 + $0x138] sm:$0xff] }
 0xf58   : > { %v3335_v24 = vmul.f32 %v3331_v21, %v6526_v11  ;;  %v4966_v21 = vld [vmem:[%s7379_s12 + $0x130] sm:$0xff] }
 0xf59   : > { %v3334_v25 = vmul.f32 %v3326_v23, %v6519_v3 }
 0xf5a   : > { %4940 = vst [vmem:[%s6697_s2 + $0x18] sm:$0xff] %v3335_v24  ;;  %v3340_v27 = vsel %vm1981_vm13, %v3335_v24, -inf }
 0xf5b   : > { %v3339_v26 = vsel %vm1981_vm13, %v3334_v25, -inf  ;;  %4939 = vst [vmem:[%s6697_s2 + $0x10] sm:$0xff] %v3334_v25 }
 0xf5c   : > { %3341 = vmax.xlane.f32.xlu1 %v3339_v26 }
 0xf60   : > { %3343 = vmax.xlane.f32.xlu1 %v3340_v27 }
 0xfe9   : > { %v3342_v41 = vpop.xlane.xlu1 %3341 }
 0xfea   : > { %v3345_v42 = vsub.f32 %v3339_v26, %v3342_v41  ;;  %v4984_v41 = vld [vmem:[%s7381_s14 + $0x60] sm:$0xff] }
 0xfec   : > { %v3347_v43 = vmul.f32 1.442695, %v3345_v42  ;;  %v4985_v42 = vld [vmem:[%s7381_s14 + $0x68] sm:$0xff] }
 0xfed   : > { %v3344_v44 = vpop.xlane.xlu1 %3343 }
 0xfee   : > { %6265 = vpow2.f32 %v3347_v43  ;;  %v3346_v45 = vsub.f32 %v3340_v27, %v3344_v44  ;;  %v6118_v27 = vpack.c.bf16 %v4967_v22, %v4966_v21  ;;  %v6130_v44 = vpack.c.bf16 %v4985_v42, %v4984_v41  ;;  %v5004_v22 = vld [vmem:[%s7379_s12 + $0x1c0] sm:$0xff] }
 0xff0   : > { %v3349_v46 = vmul.f32 1.442695, %v3346_v45 }
 0xff2   : > { %6267 = vpow2.f32 %v3349_v46 }
 0xff8   : > { %v6266_v47 = vpop.eup %6265 }
 0xff9   : > { %v3351_v48 = vsel %vm1981_vm13, %v6266_v47, 0.0  ;;  %v4986_v47 = vld [vmem:[%s7381_s14 + $0x70] sm:$0xff] }
 0xffa   : > { %3353 = vadd.xlane.f32.xlu1 %v3351_v48 }
 0xffc   : > { %v6268_v50 = vpop.eup %6267 }
 0xffd   : > { %v3352_v51 = vsel %vm1981_vm13, %v6268_v50, 0.0 }
 0xffe   : > { %3355 = vadd.xlane.f32.xlu1 %v3352_v51 }
0x1087   : > { %v3354_v1 = vpop.xlane.xlu1 %3353 }
0x1088   : > { %6269 = vrcp.f32 %v3354_v1  ;;  %v5012_v1 = vld [vmem:[%s7381_s14 + $0x80] sm:$0xff] }
0x108b   : > { %v3356_v2 = vpop.xlane.xlu1 %3355 }
0x108c   : > { %6271 = vrcp.f32 %v3356_v2  ;;  %v5013_v2 = vld [vmem:[%s7381_s14 + $0x88] sm:$0xff] }
0x1092   : > { %v6270_v4 = vpop.eup %6269 }
0x1093   : > { %v3359_v5 = vmul.f32 %v6270_v4, %v3351_v48  ;;  %v4987_v48 = vld [vmem:[%s7381_s14 + $0x78] sm:$0xff]  ;;  %v6162_v4 = vpack.c.bf16 %v5013_v2, %v5012_v1  ;;  %v5022_v1 = vld [vmem:[%s7379_s12 + $0x1f0] sm:$0xff] }
0x1094   : > { %v6134_v50 = vpack.c.bf16 %v4987_v48, %v4986_v47  ;;  %v5024_v47 = vld [vmem:[%s7379_s12 + $0x200] sm:$0xff]  ;;  %v5025_v48 = vld [vmem:[%s7379_s12 + $0x208] sm:$0xff]  ;;  %v5023_v2 = vld [vmem:[%s7379_s12 + $0x1f8] sm:$0xff] }
0x1095   : > { %v3361_v6 = vmul.f32 %v3359_v5, %v6519_v3  ;;  %v4989_v5 = vld [vmem:[%s7382_s15 + $0x3] ss:$0 sm:$0xff] }
0x1096   : > { %v6272_v7 = vpop.eup %6271 }
0x1097   : > { %5688 = vmatprep.mubr.f32.mxu1 %v3361_v6  ;;  %v3360_v8 = vmul.f32 %v6272_v7, %v3352_v51  ;;  %v4983_v51 = vld [vmem:[%s7380_s13 + $0x3] ss:$0 sm:$0xff] }
0x1099   : > { %v3362_v9 = vmul.f32 %v3360_v8, %v6526_v11 }
0x109b   : > { %5689 = vmatmul.mubr.f32.vlgmr.msra.gmra.mrb[14].mxu1 %v3362_v9 }
0x109c   : > { %6141 = vmatpush3.bf16.msra.mxu1 %v6138_v58  ;;  %v5017_v58 = vld [vmem:[%s7382_s15 + $0x4] ss:$0 sm:$0xff] }
0x109d   : > { %6143 = vmatprep.subr.bf16.mxu1 %v6142_v61 }
0x10a0   : > { %6145 = vmatpush3.bf16.msra.mxu1 %v6142_v61 }
0x10a1   : > { %6147 = vmatprep.subr.bf16.mxu1 %v6146_v0 }
0x116e   : > { %v5690_v20 = vpop.f32.mrb[14].mxu1 }
0x116f   : > { %v7119_v23 = vadd.f32 %v5690_v20, %v4963_v19  ;;  %v3461_v24 = vpop.f32.mrb[15].mxu1 }
0x1170   : > { %v7121_v25 = vadd.f32 %v4963_v19, %v3461_v24  ;;  %v6150_v19 = vpack.c.bf16 %v4995_v14, %v4994_v13 }
0x1171   : > { %v3471_v26 = vrot.slane %v7119_v23, 7  ;;  %v3477_v37 = vrot.slane %v7119_v23, 1 }
0x1172   : > { %v3470_v28 = vrot.slane %v7121_v25, 7  ;;  %5699 = vmatprep.mubr.msk.f32.mxu0 %vm733_vm1, %v7121_v25  ;;  %v3476_v36 = vrot.slane %v7121_v25, 1 }
0x1173   : > { %5700 = vmatmul.mubr.msk.f32.vlgmr.msra.gmra.mrb[18].mxu0 %vm733_vm1, %v7119_v23 }
0x1174   : > { %6117 = vmatpush3.bf16.msra.mxu0 %v6114_v18  ;;  %v3473_v31 = vsel %vm702_vm2, %v3471_v26, %v3470_v28  ;;  %v3472_v40 = vsel %vm702_vm2, %v3470_v28, %v3471_v26  ;;  %v3478_v43 = vsel %vm715_vm4, %v3476_v36, %v3477_v37  ;;  %v3479_v45 = vsel %vm715_vm4, %v3477_v37, %v3476_v36  ;;  %v5007_v28 = vld [vmem:[%s7379_s12 + $0x1d8] sm:$0xff]  ;;  %v5014_v36 = vld [vmem:[%s7381_s14 + $0x90] sm:$0xff] }
0x1175   : > { %6119 = vmatprep.subr.bf16.mxu0 %v6118_v27  ;;  %v3474_v32 = vsel %vm698_vm3, %v3473_v31, 0.0  ;;  %v3481_v46 = vsel %vm712_vm5, %v3479_v45, 0.0  ;;  %v5015_v37 = vld [vmem:[%s7381_s14 + $0x98] sm:$0xff] }
0x1176   : > { %5710 = vmatprep.mubr.msk.f32.mxu0 %vm733_vm1, %v3474_v32 }
0x1178   : > { %6121 = vmatpush3.bf16.msra.mxu0 %v6118_v27  ;;  %v5006_v27 = vld [vmem:[%s7379_s12 + $0x1d0] sm:$0xff] }
0x1179   : > { %6123 = vmatprep.subr.bf16.mxu0 %v6122_v33  ;;  %v6158_v31 = vpack.c.bf16 %v5007_v28, %v5006_v27 }
0x117b   : > { %5711 = vmatmul.mubr.msk.f32.vlgmr.msra.gmra.mrb[18].mxu0 %vm733_vm1, %v3472_v40  ;;  %v5011_v40 = vld [vmem:[%s7380_s13 + $0x4] ss:$0 sm:$0xff] }
0x117c   : > { %6125 = vmatpush3.bf16.msra.mxu0 %v6122_v33  ;;  %5721 = vmatprep.mubr.msk.f32.mxu0 %vm733_vm1, %v3478_v43 }
0x117d   : > { %6127 = vmatprep.subr.bf16.mxu0 %v6126_v38 }
0x1180   : > { %6129 = vmatpush3.bf16.msra.mxu0 %v6126_v38  ;;  %v6166_v38 = vpack.c.bf16 %v5015_v37, %v5014_v36  ;;  %v5045_v36 = vld [vmem:[%s7382_s15 + $0x5] ss:$0 sm:$0xff] }
0x1181   : > { %6131 = vmatprep.subr.bf16.mxu0 %v6130_v44 }
0x1183   : > { %5722 = vmatmul.mubr.msk.f32.vlgmr.msra.gmra.mrb[18].mxu0 %vm733_vm1, %v3481_v46 }
0x1184   : > { %6133 = vmatpush3.bf16.msra.mxu0 %v6130_v44 }
0x1185   : > { %6135 = vmatprep.subr.bf16.mxu0 %v6134_v50 }
0x1188   : > { %6137 = vmatpush3.bf16.msra.mxu0 %v6134_v50  ;;  %v6170_v50 = vpack.c.bf16 %v5025_v48, %v5024_v47 }
0x1189   : > { %6163 = vmatprep.subr.bf16.mxu0 %v6162_v4 }
0x1256   : > { %v5723_v52 = vpop.f32.mrb[18].mxu0 }
0x1257   : > { %v3751_v53 = vadd.f32 %v5723_v52, %v4983_v51  ;;  %v3731_v54 = vpop.f32.mrb[19].mxu0  ;;  %v5027_v52 = vld [vmem:[%s7379_s12 + $0x218] sm:$0xff] }
0x1258   : > { %v3750_v55 = vadd.f32 %v4983_v51, %v3731_v54  ;;  %v5026_v51 = vld [vmem:[%s7379_s12 + $0x210] sm:$0xff]  ;;  %v5020_v54 = vld [vmem:[%s7379_s12 + $0x1e0] sm:$0xff] }
0x1259   : > { %v3753_v15 = vmax.f32 %v3751_v53, 0.0  ;;  %v6174_v53 = vpack.c.bf16 %v5027_v52, %v5026_v51 }
0x125a   : > { %v3752_v49 = vmax.f32 %v3750_v55, 0.0  ;;  %v5021_v55 = vld [vmem:[%s7379_s12 + $0x1e8] sm:$0xff] }
0x125c   : > { %5732 = vmatprep.mubr.msk.f32.mxu0 %vm733_vm1, %v3752_v49  ;;  %v6178_v49 = vpack.c.bf16 %v5021_v55, %v5020_v54 }
0x125d   : > { %5733 = vmatmul.mubr.msk.f32.vlgmr.msra.gmra.mrb[20].mxu0 %vm733_vm1, %v3753_v15  ;;  %v5040_v15 = vld [vmem:[%s7381_s14 + $0xa0] sm:$0xff] }
0x125e   : > { %6165 = vmatpush3.bf16.msra.mxu0 %v6162_v4  ;;  %v6194_v57 = vpack.c.bf16 %v5041_v56, %v5040_v15 }
0x125f   : > { %6167 = vmatprep.subr.bf16.mxu0 %v6166_v38 }
0x1262   : > { %6169 = vmatpush3.bf16.msra.mxu0 %v6166_v38 }
0x1263   : > { %6171 = vmatprep.subr.bf16.mxu0 %v6170_v50 }
0x1330   : > { %v5734_v6 = vpop.f32.mrb[20].mxu0 }
0x1331   : > { %v3845_v7 = vadd.f32 %v5734_v6, %v4989_v5  ;;  %v3839_v8 = vpop.f32.mrb[21].mxu0  ;;  %v6182_v6 = vpack.c.bf16 %v5023_v2, %v5022_v1 }
0x1332   : > { %v3840_v9 = vadd.f32 %v4989_v5, %v3839_v8 }
0x1333   : > { %v3849_v10 = vadd.f32 %v3845_v7, %v7119_v23  ;;  %v5005_v23 = vld [vmem:[%s7379_s12 + $0x1c8] sm:$0xff] }
0x1334   : > { %v3848_v12 = vadd.f32 %v3840_v9, %v7121_v25  ;;  %v6154_v26 = vpack.c.bf16 %v5005_v23, %v5004_v22  ;;  %v5032_v9 = vld [vmem:[%s7379_s12 + $0x220] sm:$0xff]  ;;  %v5042_v22 = vld [vmem:[%s7381_s14 + $0xb0] sm:$0xff] }
0x1335   : > { %v7212_v16 = vmul.f32 %v3849_v10, %v6526_v11  ;;  %v5033_v10 = vld [vmem:[%s7379_s12 + $0x228] sm:$0xff]  ;;  %v6198_v23 = vpack.c.bf16 %v5043_v17, %v5042_v22 }
0x1336   : > { %v7215_v18 = vmul.f32 %v3848_v12, %v6519_v3  ;;  %v6186_v14 = vpack.c.bf16 %v5033_v10, %v5032_v9 }
0x1337   : > { %v3853_v20 = vrot.slane %v7212_v16, 6  ;;  %v3859_v30 = vrot.slane %v7212_v16, 2 }
0x1338   : > { %5743 = vmatprep.mubr.msk.f32.mxu1 %vm733_vm1, %v7215_v18  ;;  %v3852_v21 = vrot.slane %v7215_v18, 6  ;;  %v3858_v29 = vrot.slane %v7215_v18, 2 }
0x1339   : > { %5744 = vmatmul.mubr.msk.f32.vlgmr.msra.gmra.mrb[16].mxu1 %vm733_vm1, %v7212_v16 }
0x133a   : > { %6149 = vmatpush3.bf16.msra.mxu1 %v6146_v0  ;;  %v3855_v24 = vsel %vm1105_vm6, %v3853_v20, %v3852_v21  ;;  %v3854_v32 = vsel %vm1105_vm6, %v3852_v21, %v3853_v20  ;;  %v3860_v33 = vsel %vm1118_vm8, %v3858_v29, %v3859_v30  ;;  %v3861_v34 = vsel %vm1118_vm8, %v3859_v30, %v3858_v29  ;;  %v4958_v30 = vld [vmem:[%s7383_s16 + $0x20] sm:$0xff] }
0x133b   : > { %6151 = vmatprep.subr.bf16.mxu1 %v6150_v19  ;;  %v3856_v25 = vsel %vm1101_vm7, %v3855_v24, 0.0  ;;  %v3863_v35 = vsel %vm1115_vm9, %v3861_v34, 0.0  ;;  %v5039_v24 = vld [vmem:[%s7380_s13 + $0x5] ss:$0 sm:$0xff]  ;;  %v4961_v34 = vld [vmem:[%s7383_s16 + $0x38] sm:$0xff] }
0x133c   : > { %5754 = vmatprep.mubr.msk.f32.mxu1 %vm733_vm1, %v3856_v25 }
0x133e   : > { %6153 = vmatpush3.bf16.msra.mxu1 %v6150_v19 }
0x133f   : > { %6155 = vmatprep.subr.bf16.mxu1 %v6154_v26 }
0x1341   : > { %5755 = vmatmul.mubr.msk.f32.vlgmr.msra.gmra.mrb[16].mxu1 %vm733_vm1, %v3854_v32 }
0x1342   : > { %6157 = vmatpush3.bf16.msra.mxu1 %v6154_v26  ;;  %5765 = vmatprep.mubr.msk.f32.mxu1 %vm733_vm1, %v3860_v33  ;;  %v4960_v33 = vld [vmem:[%s7383_s16 + $0x30] sm:$0xff] }
0x1343   : > { %6159 = vmatprep.subr.bf16.mxu1 %v6158_v31 }
0x1346   : > { %6161 = vmatpush3.bf16.msra.mxu1 %v6158_v31  ;;  %v4959_v31 = vld [vmem:[%s7383_s16 + $0x28] sm:$0xff] }
0x1347   : > { %6195 = vmatprep.subr.bf16.mxu1 %v6194_v57  ;;  %v6202_v32 = vpack.c.bf16 %v4959_v31, %v4958_v30 }
0x1349   : > { %5766 = vmatmul.mubr.msk.f32.vlgmr.msra.gmra.mrb[16].mxu1 %vm733_vm1, %v3863_v35  ;;  %v6206_v35 = vpack.c.bf16 %v4961_v34, %v4960_v33 }
0x134a   : > { %6197 = vmatpush3.bf16.msra.mxu1 %v6194_v57 }
0x134b   : > { %6199 = vmatprep.subr.bf16.mxu1 %v6198_v23 }
0x134e   : > { %6201 = vmatpush3.bf16.msra.mxu1 %v6198_v23 }
0x134f   : > { %6203 = vmatprep.subr.bf16.mxu1 %v6202_v32 }
0x141c   : > { %v5767_v41 = vpop.f32.mrb[16].mxu1 }
0x141d   : > { %v4133_v42 = vadd.f32 %v5767_v41, %v5011_v40  ;;  %v4113_v43 = vpop.f32.mrb[17].mxu1 }
0x141e   : > { %v4132_v44 = vadd.f32 %v5011_v40, %v4113_v43 }
0x141f   : > { %v4135_v46 = vmax.f32 %v4133_v42, 0.0 }
0x1420   : > { %v4134_v45 = vmax.f32 %v4132_v44, 0.0 }
0x1422   : > { %5776 = vmatprep.mubr.msk.f32.mxu0 %vm733_vm1, %v4134_v45 }
0x1423   : > { %5777 = vmatmul.mubr.msk.f32.vlgmr.msra.gmra.mrb[22].mxu0 %vm733_vm1, %v4135_v46  ;;  %v5048_v46 = vld [vmem:[%s7384_s17 + $0x1] ss:$0 sm:$0xff] }
0x1424   : > { %6173 = vmatpush3.bf16.msra.mxu0 %v6170_v50 }
0x1425   : > { %6175 = vmatprep.subr.bf16.mxu0 %v6174_v53 }
0x1428   : > { %6177 = vmatpush3.bf16.msra.mxu0 %v6174_v53 }
0x1429   : > { %6179 = vmatprep.subr.bf16.mxu0 %v6178_v49 }
0x14f6   : > { %v5778_v59 = vpop.f32.mrb[22].mxu0 }
0x14f7   : > { %v4227_v60 = vadd.f32 %v5778_v59, %v5017_v58  ;;  %v4221_v61 = vpop.f32.mrb[23].mxu0 }
0x14f8   : > { %v4222_v62 = vadd.f32 %v5017_v58, %v4221_v61 }
0x14f9   : > { %v4231_v63 = vadd.f32 %v4227_v60, %v7212_v16  ;;  %v5034_v16 = vld [vmem:[%s7379_s12 + $0x230] sm:$0xff] }
0x14fa   : > { %v4230_v0 = vadd.f32 %v4222_v62, %v7215_v18  ;;  %v5035_v18 = vld [vmem:[%s7379_s12 + $0x238] sm:$0xff] }
0x14fb   : > { %v4233_v4 = vmul.f32 %v4231_v63, %v6526_v11  ;;  %v6190_v19 = vpack.c.bf16 %v5035_v18, %v5034_v16 }
0x14fc   : > { %v4232_v5 = vmul.f32 %v4230_v0, %v6519_v3 }
0x14fd   : > { %v4235_v7 = vrot.slane %v4233_v4, 4 }
0x14fe   : > { %5787 = vmatprep.mubr.msk.f32.mxu0 %vm733_vm1, %v4232_v5  ;;  %v4234_v8 = vrot.slane %v4232_v5, 4 }
0x14ff   : > { %5788 = vmatmul.mubr.msk.f32.vlgmr.msra.gmra.mrb[24].mxu0 %vm733_vm1, %v4233_v4 }
0x1500   : > { %6181 = vmatpush3.bf16.msra.mxu0 %v6178_v49  ;;  %v4237_v12 = vsel %vm1501_vm10, %v4235_v7, %v4234_v8  ;;  %v4236_v20 = vsel %vm1501_vm10, %v4234_v8, %v4235_v7 }
0x1501   : > { %6183 = vmatprep.subr.bf16.mxu0 %v6182_v6  ;;  %v4238_v13 = vsel %vm1497_vm11, %v4237_v12, 0.0  ;;  %v4241_v21 = vsel %vm1511_vm12, %v4237_v12, 0.0 }
0x1502   : > { %5798 = vmatprep.mubr.msk.f32.mxu0 %vm733_vm1, %v4238_v13 }
0x1504   : > { %6185 = vmatpush3.bf16.msra.mxu0 %v6182_v6 }
0x1505   : > { %6187 = vmatprep.subr.bf16.mxu0 %v6186_v14 }
0x1507   : > { %5799 = vmatmul.mubr.msk.f32.vlgmr.msra.gmra.mrb[24].mxu0 %vm733_vm1, %v4236_v20 }
0x1508   : > { %6189 = vmatpush3.bf16.msra.mxu0 %v6186_v14  ;;  %5809 = vmatprep.mubr.msk.f32.mxu0 %vm733_vm1, %v4236_v20 }
0x1509   : > { %6191 = vmatprep.subr.bf16.mxu0 %v6190_v19 }
0x150c   : > { %6193 = vmatpush3.bf16.msra.mxu0 %v6190_v19 }
0x150f   : > { %5810 = vmatmul.mubr.msk.f32.vlgmr.msra.gmra.mrb[24].mxu0 %vm733_vm1, %v4241_v21 }
0x15e2   : > { %v5811_v25 = vpop.f32.mrb[24].mxu0 }
0x15e3   : > { %v4511_v39 = vadd.f32 %v5811_v25, %v5039_v24  ;;  %v4491_v26 = vpop.f32.mrb[25].mxu0 }
0x15e4   : > { %v4510_v27 = vadd.f32 %v5039_v24, %v4491_v26 }
0x15e5   : > { %v4513_v29 = vmax.f32 %v4511_v39, 0.0 }
0x15e6   : > { %v4512_v28 = vmax.f32 %v4510_v27, 0.0 }
0x15e8   : > { %5820 = vmatprep.mubr.msk.f32.mxu1 %vm733_vm1, %v4512_v28 }
0x15e9   : > { %5821 = vmatmul.mubr.msk.f32.vlgmr.msra.gmra.mrb[18].mxu1 %vm733_vm1, %v4513_v29 }
0x15ea   : > { %6205 = vmatpush3.bf16.msra.mxu1 %v6202_v32 }
0x15eb   : > { %6207 = vmatprep.subr.bf16.mxu1 %v6206_v35 }
0x15ee   : > { %6209 = vmatpush3.bf16.msra.mxu1 %v6206_v35 }
0x16bc   : > { %v5822_v37 = vpop.f32.mrb[18].mxu1 }
0x16bd   : > { %v4605_v38 = vadd.f32 %v5822_v37, %v5045_v36  ;;  %v4599_v40 = vpop.f32.mrb[19].mxu1 }
0x16be   : > { %v4600_v41 = vadd.f32 %v5045_v36, %v4599_v40 }
0x16bf   : > { %v4609_v42 = vadd.f32 %v4605_v38, %v4233_v4 }
0x16c0   : > { %v4608_v43 = vadd.f32 %v4600_v41, %v4232_v5 }
0x16c1   : > { %v4611_v45 = vmul.f32 %v4609_v42, %v6526_v11 }
0x16c2   : > { %v4610_v44 = vmul.f32 %v4608_v43, %v6519_v3 }
0x16c4   : > { %5831 = vmatprep.mubr.msk.f32.mxu1 %vm733_vm1, %v4610_v44 }
0x16c5   : > { %5832 = vmatmul.mubr.msk.f32.vlgmr.msra.gmra.mrb[20].mxu1 %vm733_vm1, %v4611_v45 }
0x1798   : > { %v5833_v47 = vpop.f32.mrb[20].mxu1 }
0x1799   : > { %v4696_v48 = vadd.f32 %v5833_v47, %v5048_v46  ;;  %v4690_v50 = vpop.f32.mrb[21].mxu1 }
0x179a   : > { %v4691_v51 = vadd.f32 %v5048_v46, %v4690_v50 }
0x179b   : > { %v4700_v52 = vmul.f32 %v4696_v48, %v6526_v11 }
0x179c   : > { %v4699_v53 = vmul.f32 %v4691_v51, %v6519_v3 }
0x179d   : > { %5052 = vst [vmem:[%s6697_s2 + $0x28] sm:$0xff] %v4700_v52 }
0x179e   : > { %5051 = vst [vmem:[%s6697_s2 + $0x20] sm:$0xff] %v4699_v53 }
0x179f PF: > { %s28_s27 = sadd.s32 1, %s6279_s27  }
0x17a0   : > { %p25_p4 = scmp.ge.s32.totalorder %s28_s27, 4  }
0x17a2   :  { %27 = sbr.rel (!%p25_p4) target bundleno = 4 (0x4), region = 177 }

</bundles_post_ra>
